<compile_context>
chip_gen: v7x
topology: tpu7x:2x2x1
jax: 0.10.0
libtpu: 0.0.40
codegen_flags: <defaults>
</compile_context>

<pallas_src>
import jax
import jax.numpy as jnp
from jax.experimental import pallas as pl
from jax.experimental.pallas import tpu as pltpu

EPS = 1e-5
PRED_PAD = 128  # lane-dense padding for the (N, 1) temporal-prediction output


# ---------------------------------------------------------------- helpers ---
def _bn_train(h):
    """BatchNorm1d (training mode), gamma=1, beta=0, biased var, one-pass stats."""
    mu = jnp.mean(h, axis=0, keepdims=True)
    ex2 = jnp.mean(h * h, axis=0, keepdims=True)
    var = jnp.maximum(ex2 - mu * mu, 0.0)
    return (h - mu) * jax.lax.rsqrt(var + EPS)


# ------------------------------------------------------------ fused kernel ---
def fused_kernel(x1_ref, x2_ref, wb_ref, bb_ref,
                 w1_ref, b1_ref, w2_ref, b2_ref, w3_ref, b3_ref, g3_ref, be3_ref,
                 wt1a_ref, wt1b_ref, wt2_ref, wt3_ref, bt3_ref,
                 z_ref, pred_ref):
    wb = wb_ref[...]            # (C, D, 1)  per-channel columns (sublane layout)
    bb = bb_ref[...]            # (1, D, 1)
    n_ch = wb.shape[0]

    def backbone(x):            # x: (N, C, HW) -> (N, D) float32
        n, _, hw = x.shape
        d = wb.shape[1]
        # C is tiny and static: unrolled broadcast-FMAs on the VPU with lane axis = HW,
        # instead of a nearly-empty K=C MXU contraction.  Bias is the acc initializer.
        acc = jnp.broadcast_to(bb, (n, d, hw))
        for ci in range(n_ch):
            acc = acc + x[:, ci:ci + 1, :] * wb[ci:ci + 1, :, :]   # (N,1,HW)*(1,D,1)
        acc = jnp.maximum(acc, 0.0)                                 # ReLU
        return jnp.mean(acc, axis=-1)                               # global avg pool

    def projector(f):
        h = jnp.dot(f, w1_ref[...], preferred_element_type=jnp.float32) + b1_ref[...]
        h = jnp.maximum(_bn_train(h), 0.0)
        h = jnp.dot(h, w2_ref[...], preferred_element_type=jnp.float32) + b2_ref[...]
        h = jnp.maximum(_bn_train(h), 0.0)
        h = jnp.dot(h, w3_ref[...], preferred_element_type=jnp.float32) + b3_ref[...]
        return g3_ref[...] * _bn_train(h) + be3_ref[...]            # norm_last='affine_BN'

    def temp_pred(f1, f2):
        # concat-free first layer: dot(b1, W1a) + dot(b2, W1b)  ==  dot([b1|b2], W1)
        h = (jnp.dot(f1, wt1a_ref[...], preferred_element_type=jnp.float32)
             + jnp.dot(f2, wt1b_ref[...], preferred_element_type=jnp.float32))
        h = jnp.maximum(_bn_train(h), 0.0)
        h = jnp.dot(h, wt2_ref[...], preferred_element_type=jnp.float32)
        h = jnp.maximum(_bn_train(h), 0.0)
        # output width 1 -> VPU multiply + lane reduction instead of a 1-lane MXU pass
        return jnp.sum(h * wt3_ref[...], axis=-1, keepdims=True) + bt3_ref[...]

    f1 = backbone(x1_ref[...])
    f2 = backbone(x2_ref[...])

    z1 = projector(f1)          # BN stats are per view (never mixed across views)
    z2 = projector(f2)
    h3 = z1.shape[-1]
    z_ref[:, :h3] = z1          # packed lane-dense output slab [z1 | z2]
    z_ref[:, h3:] = z2

    pred = temp_pred(f1, f2)                                        # (N, 1)
    pred_ref[...] = jnp.broadcast_to(pred, pred_ref.shape)          # lane-dense store


# ----------------------------------------------------------- full forward ---
def augself_vicreg_forward(x1, x2, backbone_params, proj_params, temp_params):
    """x1, x2: NCHW float32. Returns (z1, z2, pred). One fused Pallas kernel."""
    n, c, hh, ww = x1.shape
    hw = hh * ww
    x1f = x1.reshape(n, c, hw)                      # free reshape, NO transpose
    x2f = x2.reshape(n, c, hw)

    wb, bb = backbone_params                        # wb: (C, D), bb: (1, D)
    d = wb.shape[1]
    wb_r = wb.reshape(c, d, 1)                      # per-channel column layout for VPU FMAs
    bb_r = bb.reshape(1, d, 1)

    w1, b1, w2, b2, w3, b3, g3, be3 = proj_params
    h3 = w3.shape[1]

    wt1, wt2, wt3, bt3 = temp_params
    wt1a, wt1b = wt1[:d], wt1[d:]                   # split -> no lane-axis concat in-kernel
    wt3_row = wt3.reshape(1, -1)                    # (1, h2) row for the VPU reduction

    inputs = (x1f, x2f, wb_r, bb_r,
              w1, b1, w2, b2, w3, b3, g3, be3,
              wt1a, wt1b, wt2, wt3_row, bt3)

    full = lambda a: pl.BlockSpec(a.shape, lambda: (0,) * a.ndim)

    # TODO(synk): at production VICReg sizes (hidden=8192) this grid=() kernel must be
    # tiled over N / hidden with two-pass BN stats to fit v7x's 64 MiB VMEM, shard over
    # both TensorCores, and use bf16 MXU operands; at these test shapes grid=() is optimal.
    z_packed, pred_pad = pl.pallas_call(
        fused_kernel,
        out_shape=(jax.ShapeDtypeStruct((n, 2 * h3), jnp.float32),
                   jax.ShapeDtypeStruct((n, PRED_PAD), jnp.float32)),
        grid_spec=pltpu.PrefetchScalarGridSpec(
            num_scalar_prefetch=0,
            grid=(),
            in_specs=[full(a) for a in inputs],
            out_specs=(pl.BlockSpec((n, 2 * h3), lambda: (0, 0)),
                       pl.BlockSpec((n, PRED_PAD), lambda: (0, 0))),
        ),
    )(*inputs)

    z1 = z_packed[:, :h3]
    z2 = z_packed[:, h3:]
    pred = pred_pad[:, :1]
    return z1, z2, pred


# ----------------------------------------------------------------- driver ---
if __name__ == "__main__":
    # Small shapes: batch=2, channels=4, spatial=16x16, repre_dim=32, proj hidden=(64,64,64)
    N, C, H, W = 2, 4, 16, 16
    REPRE_DIM = 32
    PROJ_HID = (64, 64, 64)
    TEMP_IN = 2 * REPRE_DIM                       # repre_dim * 2
    TEMP_HID = (TEMP_IN // 2, TEMP_IN // 2, 1)    # (32, 32, 1)

    key = jax.random.PRNGKey(0)
    ks = jax.random.split(key, 12)

    x1 = jax.random.normal(ks[0], (N, C, H, W), jnp.float32)
    x2 = jax.random.normal(ks[1], (N, C, H, W), jnp.float32)

    # Synthetic backbone (1x1 conv + ReLU + global avg pool), fc = Identity
    wb = 0.1 * jax.random.normal(ks[2], (C, REPRE_DIM), jnp.float32)
    bb = jnp.zeros((1, REPRE_DIM), jnp.float32)

    # Projector MLP (VICReg._init_weights: normal std=0.01, biases 0; last-BN gamma=1, beta=0)
    w1 = 0.01 * jax.random.normal(ks[3], (REPRE_DIM, PROJ_HID[0]), jnp.float32)
    b1 = jnp.zeros((1, PROJ_HID[0]), jnp.float32)
    w2 = 0.01 * jax.random.normal(ks[4], (PROJ_HID[0], PROJ_HID[1]), jnp.float32)
    b2 = jnp.zeros((1, PROJ_HID[1]), jnp.float32)
    w3 = 0.01 * jax.random.normal(ks[5], (PROJ_HID[1], PROJ_HID[2]), jnp.float32)
    b3 = jnp.zeros((1, PROJ_HID[2]), jnp.float32)
    g3 = jnp.ones((1, PROJ_HID[2]), jnp.float32)
    be3 = jnp.zeros((1, PROJ_HID[2]), jnp.float32)
    proj_params = (w1, b1, w2, b2, w3, b3, g3, be3)

    # tempPredictor MLP (bias=False except last)
    wt1 = 0.01 * jax.random.normal(ks[6], (TEMP_IN, TEMP_HID[0]), jnp.float32)
    wt2 = 0.01 * jax.random.normal(ks[7], (TEMP_HID[0], TEMP_HID[1]), jnp.float32)
    wt3 = 0.01 * jax.random.normal(ks[8], (TEMP_HID[1], TEMP_HID[2]), jnp.float32)
    bt3 = jnp.zeros((1, 1), jnp.float32)
    temp_params = (wt1, wt2, wt3, bt3)

    z1, z2, pred = jax.jit(augself_vicreg_forward)(
        x1, x2, (wb, bb), proj_params, temp_params)
    jax.block_until_ready((z1, z2, pred))

    assert z1.shape == (N, PROJ_HID[-1]) and z2.shape == (N, PROJ_HID[-1])
    assert pred.shape == (N, 1)
    assert jnp.all(jnp.isfinite(z1)) and jnp.all(jnp.isfinite(z2)) and jnp.all(jnp.isfinite(pred))

    print("KERNEL_OK")
</pallas_src>

<mosaic_0001>
module attributes {stable_mosaic.version = 11 : i64} {
  func.func @fused_kernel(%arg0: memref<2x4x256xf32, #tpu.memory_space<vmem>>, %arg1: memref<2x4x256xf32, #tpu.memory_space<vmem>>, %arg2: memref<4x32x1xf32, #tpu.memory_space<vmem>>, %arg3: memref<1x32x1xf32, #tpu.memory_space<vmem>>, %arg4: memref<32x64xf32, #tpu.memory_space<vmem>>, %arg5: memref<1x64xf32, #tpu.memory_space<vmem>>, %arg6: memref<64x64xf32, #tpu.memory_space<vmem>>, %arg7: memref<1x64xf32, #tpu.memory_space<vmem>>, %arg8: memref<64x64xf32, #tpu.memory_space<vmem>>, %arg9: memref<1x64xf32, #tpu.memory_space<vmem>>, %arg10: memref<1x64xf32, #tpu.memory_space<vmem>>, %arg11: memref<1x64xf32, #tpu.memory_space<vmem>>, %arg12: memref<32x32xf32, #tpu.memory_space<vmem>>, %arg13: memref<32x32xf32, #tpu.memory_space<vmem>>, %arg14: memref<32x32xf32, #tpu.memory_space<vmem>>, %arg15: memref<1x32xf32, #tpu.memory_space<vmem>>, %arg16: memref<1x1xf32, #tpu.memory_space<vmem>>, %arg17: memref<2x128xf32, #tpu.memory_space<vmem>>, %arg18: memref<2x128xf32, #tpu.memory_space<vmem>>) attributes {dimension_semantics = [], scalar_prefetch = 0 : i64, scratch_operands = 0 : i64, tpu.core_type = #tpu.core_type<tc>} {
    %c0 = arith.constant 0 : index
    %c0_0 = arith.constant 0 : index
    %c0_1 = arith.constant 0 : index
    %0 = vector.load %arg2[%c0, %c0_0, %c0_1] : memref<4x32x1xf32, #tpu.memory_space<vmem>>, vector<4x32x1xf32>
    %c0_2 = arith.constant 0 : index
    %c0_3 = arith.constant 0 : index
    %c0_4 = arith.constant 0 : index
    %1 = vector.load %arg3[%c0_2, %c0_3, %c0_4] : memref<1x32x1xf32, #tpu.memory_space<vmem>>, vector<1x32x1xf32>
    %c0_5 = arith.constant 0 : index
    %c0_6 = arith.constant 0 : index
    %c0_7 = arith.constant 0 : index
    %2 = vector.load %arg0[%c0_5, %c0_6, %c0_7] : memref<2x4x256xf32, #tpu.memory_space<vmem>>, vector<2x4x256xf32>
    %3 = vector.shape_cast %1 : vector<1x32x1xf32> to vector<1x32x1xf32>
    %4 = vector.broadcast %3 : vector<1x32x1xf32> to vector<2x32x256xf32>
    %5 = vector.extract_strided_slice %2 {offsets = [0, 0, 0], sizes = [2, 1, 256], strides = [1, 1, 1]} : vector<2x4x256xf32> to vector<2x1x256xf32>
    %6 = vector.extract_strided_slice %0 {offsets = [0, 0, 0], sizes = [1, 32, 1], strides = [1, 1, 1]} : vector<4x32x1xf32> to vector<1x32x1xf32>
    %7 = vector.broadcast %5 : vector<2x1x256xf32> to vector<2x32x256xf32>
    %8 = vector.broadcast %6 : vector<1x32x1xf32> to vector<2x32x256xf32>
    %9 = arith.mulf %7, %8 : vector<2x32x256xf32>
    %10 = arith.addf %4, %9 : vector<2x32x256xf32>
    %11 = vector.extract_strided_slice %2 {offsets = [0, 1, 0], sizes = [2, 1, 256], strides = [1, 1, 1]} : vector<2x4x256xf32> to vector<2x1x256xf32>
    %12 = vector.extract_strided_slice %0 {offsets = [1, 0, 0], sizes = [1, 32, 1], strides = [1, 1, 1]} : vector<4x32x1xf32> to vector<1x32x1xf32>
    %13 = vector.broadcast %11 : vector<2x1x256xf32> to vector<2x32x256xf32>
    %14 = vector.broadcast %12 : vector<1x32x1xf32> to vector<2x32x256xf32>
    %15 = arith.mulf %13, %14 : vector<2x32x256xf32>
    %16 = arith.addf %10, %15 : vector<2x32x256xf32>
    %17 = vector.extract_strided_slice %2 {offsets = [0, 2, 0], sizes = [2, 1, 256], strides = [1, 1, 1]} : vector<2x4x256xf32> to vector<2x1x256xf32>
    %18 = vector.extract_strided_slice %0 {offsets = [2, 0, 0], sizes = [1, 32, 1], strides = [1, 1, 1]} : vector<4x32x1xf32> to vector<1x32x1xf32>
    %19 = vector.broadcast %17 : vector<2x1x256xf32> to vector<2x32x256xf32>
    %20 = vector.broadcast %18 : vector<1x32x1xf32> to vector<2x32x256xf32>
    %21 = arith.mulf %19, %20 : vector<2x32x256xf32>
    %22 = arith.addf %16, %21 : vector<2x32x256xf32>
    %23 = vector.extract_strided_slice %2 {offsets = [0, 3, 0], sizes = [2, 1, 256], strides = [1, 1, 1]} : vector<2x4x256xf32> to vector<2x1x256xf32>
    %24 = vector.extract_strided_slice %0 {offsets = [3, 0, 0], sizes = [1, 32, 1], strides = [1, 1, 1]} : vector<4x32x1xf32> to vector<1x32x1xf32>
    %25 = vector.broadcast %23 : vector<2x1x256xf32> to vector<2x32x256xf32>
    %26 = vector.broadcast %24 : vector<1x32x1xf32> to vector<2x32x256xf32>
    %27 = arith.mulf %25, %26 : vector<2x32x256xf32>
    %28 = arith.addf %22, %27 : vector<2x32x256xf32>
    %cst = arith.constant 0.000000e+00 : f32
    %29 = vector.broadcast %cst : f32 to vector<2x32x256xf32>
    %30 = arith.maximumf %28, %29 : vector<2x32x256xf32>
    %cst_8 = arith.constant dense<0.000000e+00> : vector<2x32xf32>
    %31 = vector.multi_reduction <add>, %30, %cst_8 [2] : vector<2x32x256xf32> to vector<2x32xf32>
    %cst_9 = arith.constant 2.560000e+02 : f32
    %32 = vector.broadcast %cst_9 : f32 to vector<2x32xf32>
    %33 = arith.divf %31, %32 : vector<2x32xf32>
    %c0_10 = arith.constant 0 : index
    %c0_11 = arith.constant 0 : index
    %c0_12 = arith.constant 0 : index
    %34 = vector.load %arg1[%c0_10, %c0_11, %c0_12] : memref<2x4x256xf32, #tpu.memory_space<vmem>>, vector<2x4x256xf32>
    %35 = vector.shape_cast %1 : vector<1x32x1xf32> to vector<1x32x1xf32>
    %36 = vector.broadcast %35 : vector<1x32x1xf32> to vector<2x32x256xf32>
    %37 = vector.extract_strided_slice %34 {offsets = [0, 0, 0], sizes = [2, 1, 256], strides = [1, 1, 1]} : vector<2x4x256xf32> to vector<2x1x256xf32>
    %38 = vector.extract_strided_slice %0 {offsets = [0, 0, 0], sizes = [1, 32, 1], strides = [1, 1, 1]} : vector<4x32x1xf32> to vector<1x32x1xf32>
    %39 = vector.broadcast %37 : vector<2x1x256xf32> to vector<2x32x256xf32>
    %40 = vector.broadcast %38 : vector<1x32x1xf32> to vector<2x32x256xf32>
    %41 = arith.mulf %39, %40 : vector<2x32x256xf32>
    %42 = arith.addf %36, %41 : vector<2x32x256xf32>
    %43 = vector.extract_strided_slice %34 {offsets = [0, 1, 0], sizes = [2, 1, 256], strides = [1, 1, 1]} : vector<2x4x256xf32> to vector<2x1x256xf32>
    %44 = vector.extract_strided_slice %0 {offsets = [1, 0, 0], sizes = [1, 32, 1], strides = [1, 1, 1]} : vector<4x32x1xf32> to vector<1x32x1xf32>
    %45 = vector.broadcast %43 : vector<2x1x256xf32> to vector<2x32x256xf32>
    %46 = vector.broadcast %44 : vector<1x32x1xf32> to vector<2x32x256xf32>
    %47 = arith.mulf %45, %46 : vector<2x32x256xf32>
    %48 = arith.addf %42, %47 : vector<2x32x256xf32>
    %49 = vector.extract_strided_slice %34 {offsets = [0, 2, 0], sizes = [2, 1, 256], strides = [1, 1, 1]} : vector<2x4x256xf32> to vector<2x1x256xf32>
    %50 = vector.extract_strided_slice %0 {offsets = [2, 0, 0], sizes = [1, 32, 1], strides = [1, 1, 1]} : vector<4x32x1xf32> to vector<1x32x1xf32>
    %51 = vector.broadcast %49 : vector<2x1x256xf32> to vector<2x32x256xf32>
    %52 = vector.broadcast %50 : vector<1x32x1xf32> to vector<2x32x256xf32>
    %53 = arith.mulf %51, %52 : vector<2x32x256xf32>
    %54 = arith.addf %48, %53 : vector<2x32x256xf32>
    %55 = vector.extract_strided_slice %34 {offsets = [0, 3, 0], sizes = [2, 1, 256], strides = [1, 1, 1]} : vector<2x4x256xf32> to vector<2x1x256xf32>
    %56 = vector.extract_strided_slice %0 {offsets = [3, 0, 0], sizes = [1, 32, 1], strides = [1, 1, 1]} : vector<4x32x1xf32> to vector<1x32x1xf32>
    %57 = vector.broadcast %55 : vector<2x1x256xf32> to vector<2x32x256xf32>
    %58 = vector.broadcast %56 : vector<1x32x1xf32> to vector<2x32x256xf32>
    %59 = arith.mulf %57, %58 : vector<2x32x256xf32>
    %60 = arith.addf %54, %59 : vector<2x32x256xf32>
    %cst_13 = arith.constant 0.000000e+00 : f32
    %61 = vector.broadcast %cst_13 : f32 to vector<2x32x256xf32>
    %62 = arith.maximumf %60, %61 : vector<2x32x256xf32>
    %cst_14 = arith.constant dense<0.000000e+00> : vector<2x32xf32>
    %63 = vector.multi_reduction <add>, %62, %cst_14 [2] : vector<2x32x256xf32> to vector<2x32xf32>
    %cst_15 = arith.constant 2.560000e+02 : f32
    %64 = vector.broadcast %cst_15 : f32 to vector<2x32xf32>
    %65 = arith.divf %63, %64 : vector<2x32xf32>
    %c0_16 = arith.constant 0 : index
    %c0_17 = arith.constant 0 : index
    %66 = vector.load %arg4[%c0_16, %c0_17] : memref<32x64xf32, #tpu.memory_space<vmem>>, vector<32x64xf32>
    %cst_18 = arith.constant dense<0.000000e+00> : vector<2x64xf32>
    %67 = tpu.matmul %33, %66, %cst_18 {dimension_numbers = #tpu.dot_dimension_numbers<[1], [0], [0], [1], [0, 0, 1, 1], [], []>} : vector<2x32xf32>, vector<32x64xf32>, vector<2x64xf32> -> vector<2x64xf32>
    %c0_19 = arith.constant 0 : index
    %c0_20 = arith.constant 0 : index
    %68 = vector.load %arg5[%c0_19, %c0_20] : memref<1x64xf32, #tpu.memory_space<vmem>>, vector<1x64xf32>
    %69 = vector.broadcast %68 : vector<1x64xf32> to vector<2x64xf32>
    %70 = arith.addf %67, %69 : vector<2x64xf32>
    %cst_21 = arith.constant dense<0.000000e+00> : vector<64xf32>
    %71 = vector.multi_reduction <add>, %70, %cst_21 [0] : vector<2x64xf32> to vector<64xf32>
    %72 = vector.shape_cast %71 : vector<64xf32> to vector<1x64xf32>
    %cst_22 = arith.constant 2.000000e+00 : f32
    %73 = vector.broadcast %cst_22 : f32 to vector<1x64xf32>
    %74 = arith.divf %72, %73 : vector<1x64xf32>
    %75 = arith.mulf %70, %70 : vector<2x64xf32>
    %cst_23 = arith.constant dense<0.000000e+00> : vector<64xf32>
    %76 = vector.multi_reduction <add>, %75, %cst_23 [0] : vector<2x64xf32> to vector<64xf32>
    %77 = vector.shape_cast %76 : vector<64xf32> to vector<1x64xf32>
    %cst_24 = arith.constant 2.000000e+00 : f32
    %78 = vector.broadcast %cst_24 : f32 to vector<1x64xf32>
    %79 = arith.divf %77, %78 : vector<1x64xf32>
    %80 = arith.mulf %74, %74 : vector<1x64xf32>
    %81 = arith.subf %79, %80 : vector<1x64xf32>
    %cst_25 = arith.constant 0.000000e+00 : f32
    %82 = vector.broadcast %cst_25 : f32 to vector<1x64xf32>
    %83 = arith.maximumf %81, %82 : vector<1x64xf32>
    %84 = vector.broadcast %74 : vector<1x64xf32> to vector<2x64xf32>
    %85 = arith.subf %70, %84 : vector<2x64xf32>
    %cst_26 = arith.constant 9.99999974E-6 : f32
    %86 = vector.broadcast %cst_26 : f32 to vector<1x64xf32>
    %87 = arith.addf %83, %86 : vector<1x64xf32>
    %88 = math.rsqrt %87 : vector<1x64xf32>
    %89 = vector.broadcast %88 : vector<1x64xf32> to vector<2x64xf32>
    %90 = arith.mulf %85, %89 : vector<2x64xf32>
    %cst_27 = arith.constant 0.000000e+00 : f32
    %91 = vector.broadcast %cst_27 : f32 to vector<2x64xf32>
    %92 = arith.maximumf %90, %91 : vector<2x64xf32>
    %c0_28 = arith.constant 0 : index
    %c0_29 = arith.constant 0 : index
    %93 = vector.load %arg6[%c0_28, %c0_29] : memref<64x64xf32, #tpu.memory_space<vmem>>, vector<64x64xf32>
    %cst_30 = arith.constant dense<0.000000e+00> : vector<2x64xf32>
    %94 = tpu.matmul %92, %93, %cst_30 {dimension_numbers = #tpu.dot_dimension_numbers<[1], [0], [0], [1], [0, 0, 1, 1], [], []>} : vector<2x64xf32>, vector<64x64xf32>, vector<2x64xf32> -> vector<2x64xf32>
    %c0_31 = arith.constant 0 : index
    %c0_32 = arith.constant 0 : index
    %95 = vector.load %arg7[%c0_31, %c0_32] : memref<1x64xf32, #tpu.memory_space<vmem>>, vector<1x64xf32>
    %96 = vector.broadcast %95 : vector<1x64xf32> to vector<2x64xf32>
    %97 = arith.addf %94, %96 : vector<2x64xf32>
    %cst_33 = arith.constant dense<0.000000e+00> : vector<64xf32>
    %98 = vector.multi_reduction <add>, %97, %cst_33 [0] : vector<2x64xf32> to vector<64xf32>
    %99 = vector.shape_cast %98 : vector<64xf32> to vector<1x64xf32>
    %cst_34 = arith.constant 2.000000e+00 : f32
    %100 = vector.broadcast %cst_34 : f32 to vector<1x64xf32>
    %101 = arith.divf %99, %100 : vector<1x64xf32>
    %102 = arith.mulf %97, %97 : vector<2x64xf32>
    %cst_35 = arith.constant dense<0.000000e+00> : vector<64xf32>
    %103 = vector.multi_reduction <add>, %102, %cst_35 [0] : vector<2x64xf32> to vector<64xf32>
    %104 = vector.shape_cast %103 : vector<64xf32> to vector<1x64xf32>
    %cst_36 = arith.constant 2.000000e+00 : f32
    %105 = vector.broadcast %cst_36 : f32 to vector<1x64xf32>
    %106 = arith.divf %104, %105 : vector<1x64xf32>
    %107 = arith.mulf %101, %101 : vector<1x64xf32>
    %108 = arith.subf %106, %107 : vector<1x64xf32>
    %cst_37 = arith.constant 0.000000e+00 : f32
    %109 = vector.broadcast %cst_37 : f32 to vector<1x64xf32>
    %110 = arith.maximumf %108, %109 : vector<1x64xf32>
    %111 = vector.broadcast %101 : vector<1x64xf32> to vector<2x64xf32>
    %112 = arith.subf %97, %111 : vector<2x64xf32>
    %cst_38 = arith.constant 9.99999974E-6 : f32
    %113 = vector.broadcast %cst_38 : f32 to vector<1x64xf32>
    %114 = arith.addf %110, %113 : vector<1x64xf32>
    %115 = math.rsqrt %114 : vector<1x64xf32>
    %116 = vector.broadcast %115 : vector<1x64xf32> to vector<2x64xf32>
    %117 = arith.mulf %112, %116 : vector<2x64xf32>
    %cst_39 = arith.constant 0.000000e+00 : f32
    %118 = vector.broadcast %cst_39 : f32 to vector<2x64xf32>
    %119 = arith.maximumf %117, %118 : vector<2x64xf32>
    %c0_40 = arith.constant 0 : index
    %c0_41 = arith.constant 0 : index
    %120 = vector.load %arg8[%c0_40, %c0_41] : memref<64x64xf32, #tpu.memory_space<vmem>>, vector<64x64xf32>
    %cst_42 = arith.constant dense<0.000000e+00> : vector<2x64xf32>
    %121 = tpu.matmul %119, %120, %cst_42 {dimension_numbers = #tpu.dot_dimension_numbers<[1], [0], [0], [1], [0, 0, 1, 1], [], []>} : vector<2x64xf32>, vector<64x64xf32>, vector<2x64xf32> -> vector<2x64xf32>
    %c0_43 = arith.constant 0 : index
    %c0_44 = arith.constant 0 : index
    %122 = vector.load %arg9[%c0_43, %c0_44] : memref<1x64xf32, #tpu.memory_space<vmem>>, vector<1x64xf32>
    %123 = vector.broadcast %122 : vector<1x64xf32> to vector<2x64xf32>
    %124 = arith.addf %121, %123 : vector<2x64xf32>
    %c0_45 = arith.constant 0 : index
    %c0_46 = arith.constant 0 : index
    %125 = vector.load %arg10[%c0_45, %c0_46] : memref<1x64xf32, #tpu.memory_space<vmem>>, vector<1x64xf32>
    %cst_47 = arith.constant dense<0.000000e+00> : vector<64xf32>
    %126 = vector.multi_reduction <add>, %124, %cst_47 [0] : vector<2x64xf32> to vector<64xf32>
    %127 = vector.shape_cast %126 : vector<64xf32> to vector<1x64xf32>
    %cst_48 = arith.constant 2.000000e+00 : f32
    %128 = vector.broadcast %cst_48 : f32 to vector<1x64xf32>
    %129 = arith.divf %127, %128 : vector<1x64xf32>
    %130 = arith.mulf %124, %124 : vector<2x64xf32>
    %cst_49 = arith.constant dense<0.000000e+00> : vector<64xf32>
    %131 = vector.multi_reduction <add>, %130, %cst_49 [0] : vector<2x64xf32> to vector<64xf32>
    %132 = vector.shape_cast %131 : vector<64xf32> to vector<1x64xf32>
    %cst_50 = arith.constant 2.000000e+00 : f32
    %133 = vector.broadcast %cst_50 : f32 to vector<1x64xf32>
    %134 = arith.divf %132, %133 : vector<1x64xf32>
    %135 = arith.mulf %129, %129 : vector<1x64xf32>
    %136 = arith.subf %134, %135 : vector<1x64xf32>
    %cst_51 = arith.constant 0.000000e+00 : f32
    %137 = vector.broadcast %cst_51 : f32 to vector<1x64xf32>
    %138 = arith.maximumf %136, %137 : vector<1x64xf32>
    %139 = vector.broadcast %129 : vector<1x64xf32> to vector<2x64xf32>
    %140 = arith.subf %124, %139 : vector<2x64xf32>
    %cst_52 = arith.constant 9.99999974E-6 : f32
    %141 = vector.broadcast %cst_52 : f32 to vector<1x64xf32>
    %142 = arith.addf %138, %141 : vector<1x64xf32>
    %143 = math.rsqrt %142 : vector<1x64xf32>
    %144 = vector.broadcast %143 : vector<1x64xf32> to vector<2x64xf32>
    %145 = arith.mulf %140, %144 : vector<2x64xf32>
    %146 = vector.broadcast %125 : vector<1x64xf32> to vector<2x64xf32>
    %147 = arith.mulf %146, %145 : vector<2x64xf32>
    %c0_53 = arith.constant 0 : index
    %c0_54 = arith.constant 0 : index
    %148 = vector.load %arg11[%c0_53, %c0_54] : memref<1x64xf32, #tpu.memory_space<vmem>>, vector<1x64xf32>
    %149 = vector.broadcast %148 : vector<1x64xf32> to vector<2x64xf32>
    %150 = arith.addf %147, %149 : vector<2x64xf32>
    %c0_55 = arith.constant 0 : index
    %c0_56 = arith.constant 0 : index
    %151 = vector.load %arg4[%c0_55, %c0_56] : memref<32x64xf32, #tpu.memory_space<vmem>>, vector<32x64xf32>
    %cst_57 = arith.constant dense<0.000000e+00> : vector<2x64xf32>
    %152 = tpu.matmul %65, %151, %cst_57 {dimension_numbers = #tpu.dot_dimension_numbers<[1], [0], [0], [1], [0, 0, 1, 1], [], []>} : vector<2x32xf32>, vector<32x64xf32>, vector<2x64xf32> -> vector<2x64xf32>
    %c0_58 = arith.constant 0 : index
    %c0_59 = arith.constant 0 : index
    %153 = vector.load %arg5[%c0_58, %c0_59] : memref<1x64xf32, #tpu.memory_space<vmem>>, vector<1x64xf32>
    %154 = vector.broadcast %153 : vector<1x64xf32> to vector<2x64xf32>
    %155 = arith.addf %152, %154 : vector<2x64xf32>
    %cst_60 = arith.constant dense<0.000000e+00> : vector<64xf32>
    %156 = vector.multi_reduction <add>, %155, %cst_60 [0] : vector<2x64xf32> to vector<64xf32>
    %157 = vector.shape_cast %156 : vector<64xf32> to vector<1x64xf32>
    %cst_61 = arith.constant 2.000000e+00 : f32
    %158 = vector.broadcast %cst_61 : f32 to vector<1x64xf32>
    %159 = arith.divf %157, %158 : vector<1x64xf32>
    %160 = arith.mulf %155, %155 : vector<2x64xf32>
    %cst_62 = arith.constant dense<0.000000e+00> : vector<64xf32>
    %161 = vector.multi_reduction <add>, %160, %cst_62 [0] : vector<2x64xf32> to vector<64xf32>
    %162 = vector.shape_cast %161 : vector<64xf32> to vector<1x64xf32>
    %cst_63 = arith.constant 2.000000e+00 : f32
    %163 = vector.broadcast %cst_63 : f32 to vector<1x64xf32>
    %164 = arith.divf %162, %163 : vector<1x64xf32>
    %165 = arith.mulf %159, %159 : vector<1x64xf32>
    %166 = arith.subf %164, %165 : vector<1x64xf32>
    %cst_64 = arith.constant 0.000000e+00 : f32
    %167 = vector.broadcast %cst_64 : f32 to vector<1x64xf32>
    %168 = arith.maximumf %166, %167 : vector<1x64xf32>
    %169 = vector.broadcast %159 : vector<1x64xf32> to vector<2x64xf32>
    %170 = arith.subf %155, %169 : vector<2x64xf32>
    %cst_65 = arith.constant 9.99999974E-6 : f32
    %171 = vector.broadcast %cst_65 : f32 to vector<1x64xf32>
    %172 = arith.addf %168, %171 : vector<1x64xf32>
    %173 = math.rsqrt %172 : vector<1x64xf32>
    %174 = vector.broadcast %173 : vector<1x64xf32> to vector<2x64xf32>
    %175 = arith.mulf %170, %174 : vector<2x64xf32>
    %cst_66 = arith.constant 0.000000e+00 : f32
    %176 = vector.broadcast %cst_66 : f32 to vector<2x64xf32>
    %177 = arith.maximumf %175, %176 : vector<2x64xf32>
    %c0_67 = arith.constant 0 : index
    %c0_68 = arith.constant 0 : index
    %178 = vector.load %arg6[%c0_67, %c0_68] : memref<64x64xf32, #tpu.memory_space<vmem>>, vector<64x64xf32>
    %cst_69 = arith.constant dense<0.000000e+00> : vector<2x64xf32>
    %179 = tpu.matmul %177, %178, %cst_69 {dimension_numbers = #tpu.dot_dimension_numbers<[1], [0], [0], [1], [0, 0, 1, 1], [], []>} : vector<2x64xf32>, vector<64x64xf32>, vector<2x64xf32> -> vector<2x64xf32>
    %c0_70 = arith.constant 0 : index
    %c0_71 = arith.constant 0 : index
    %180 = vector.load %arg7[%c0_70, %c0_71] : memref<1x64xf32, #tpu.memory_space<vmem>>, vector<1x64xf32>
    %181 = vector.broadcast %180 : vector<1x64xf32> to vector<2x64xf32>
    %182 = arith.addf %179, %181 : vector<2x64xf32>
    %cst_72 = arith.constant dense<0.000000e+00> : vector<64xf32>
    %183 = vector.multi_reduction <add>, %182, %cst_72 [0] : vector<2x64xf32> to vector<64xf32>
    %184 = vector.shape_cast %183 : vector<64xf32> to vector<1x64xf32>
    %cst_73 = arith.constant 2.000000e+00 : f32
    %185 = vector.broadcast %cst_73 : f32 to vector<1x64xf32>
    %186 = arith.divf %184, %185 : vector<1x64xf32>
    %187 = arith.mulf %182, %182 : vector<2x64xf32>
    %cst_74 = arith.constant dense<0.000000e+00> : vector<64xf32>
    %188 = vector.multi_reduction <add>, %187, %cst_74 [0] : vector<2x64xf32> to vector<64xf32>
    %189 = vector.shape_cast %188 : vector<64xf32> to vector<1x64xf32>
    %cst_75 = arith.constant 2.000000e+00 : f32
    %190 = vector.broadcast %cst_75 : f32 to vector<1x64xf32>
    %191 = arith.divf %189, %190 : vector<1x64xf32>
    %192 = arith.mulf %186, %186 : vector<1x64xf32>
    %193 = arith.subf %191, %192 : vector<1x64xf32>
    %cst_76 = arith.constant 0.000000e+00 : f32
    %194 = vector.broadcast %cst_76 : f32 to vector<1x64xf32>
    %195 = arith.maximumf %193, %194 : vector<1x64xf32>
    %196 = vector.broadcast %186 : vector<1x64xf32> to vector<2x64xf32>
    %197 = arith.subf %182, %196 : vector<2x64xf32>
    %cst_77 = arith.constant 9.99999974E-6 : f32
    %198 = vector.broadcast %cst_77 : f32 to vector<1x64xf32>
    %199 = arith.addf %195, %198 : vector<1x64xf32>
    %200 = math.rsqrt %199 : vector<1x64xf32>
    %201 = vector.broadcast %200 : vector<1x64xf32> to vector<2x64xf32>
    %202 = arith.mulf %197, %201 : vector<2x64xf32>
    %cst_78 = arith.constant 0.000000e+00 : f32
    %203 = vector.broadcast %cst_78 : f32 to vector<2x64xf32>
    %204 = arith.maximumf %202, %203 : vector<2x64xf32>
    %c0_79 = arith.constant 0 : index
    %c0_80 = arith.constant 0 : index
    %205 = vector.load %arg8[%c0_79, %c0_80] : memref<64x64xf32, #tpu.memory_space<vmem>>, vector<64x64xf32>
    %cst_81 = arith.constant dense<0.000000e+00> : vector<2x64xf32>
    %206 = tpu.matmul %204, %205, %cst_81 {dimension_numbers = #tpu.dot_dimension_numbers<[1], [0], [0], [1], [0, 0, 1, 1], [], []>} : vector<2x64xf32>, vector<64x64xf32>, vector<2x64xf32> -> vector<2x64xf32>
    %c0_82 = arith.constant 0 : index
    %c0_83 = arith.constant 0 : index
    %207 = vector.load %arg9[%c0_82, %c0_83] : memref<1x64xf32, #tpu.memory_space<vmem>>, vector<1x64xf32>
    %208 = vector.broadcast %207 : vector<1x64xf32> to vector<2x64xf32>
    %209 = arith.addf %206, %208 : vector<2x64xf32>
    %c0_84 = arith.constant 0 : index
    %c0_85 = arith.constant 0 : index
    %210 = vector.load %arg10[%c0_84, %c0_85] : memref<1x64xf32, #tpu.memory_space<vmem>>, vector<1x64xf32>
    %cst_86 = arith.constant dense<0.000000e+00> : vector<64xf32>
    %211 = vector.multi_reduction <add>, %209, %cst_86 [0] : vector<2x64xf32> to vector<64xf32>
    %212 = vector.shape_cast %211 : vector<64xf32> to vector<1x64xf32>
    %cst_87 = arith.constant 2.000000e+00 : f32
    %213 = vector.broadcast %cst_87 : f32 to vector<1x64xf32>
    %214 = arith.divf %212, %213 : vector<1x64xf32>
    %215 = arith.mulf %209, %209 : vector<2x64xf32>
    %cst_88 = arith.constant dense<0.000000e+00> : vector<64xf32>
    %216 = vector.multi_reduction <add>, %215, %cst_88 [0] : vector<2x64xf32> to vector<64xf32>
    %217 = vector.shape_cast %216 : vector<64xf32> to vector<1x64xf32>
    %cst_89 = arith.constant 2.000000e+00 : f32
    %218 = vector.broadcast %cst_89 : f32 to vector<1x64xf32>
    %219 = arith.divf %217, %218 : vector<1x64xf32>
    %220 = arith.mulf %214, %214 : vector<1x64xf32>
    %221 = arith.subf %219, %220 : vector<1x64xf32>
    %cst_90 = arith.constant 0.000000e+00 : f32
    %222 = vector.broadcast %cst_90 : f32 to vector<1x64xf32>
    %223 = arith.maximumf %221, %222 : vector<1x64xf32>
    %224 = vector.broadcast %214 : vector<1x64xf32> to vector<2x64xf32>
    %225 = arith.subf %209, %224 : vector<2x64xf32>
    %cst_91 = arith.constant 9.99999974E-6 : f32
    %226 = vector.broadcast %cst_91 : f32 to vector<1x64xf32>
    %227 = arith.addf %223, %226 : vector<1x64xf32>
    %228 = math.rsqrt %227 : vector<1x64xf32>
    %229 = vector.broadcast %228 : vector<1x64xf32> to vector<2x64xf32>
    %230 = arith.mulf %225, %229 : vector<2x64xf32>
    %231 = vector.broadcast %210 : vector<1x64xf32> to vector<2x64xf32>
    %232 = arith.mulf %231, %230 : vector<2x64xf32>
    %c0_92 = arith.constant 0 : index
    %c0_93 = arith.constant 0 : index
    %233 = vector.load %arg11[%c0_92, %c0_93] : memref<1x64xf32, #tpu.memory_space<vmem>>, vector<1x64xf32>
    %234 = vector.broadcast %233 : vector<1x64xf32> to vector<2x64xf32>
    %235 = arith.addf %232, %234 : vector<2x64xf32>
    %c0_94 = arith.constant 0 : index
    %c0_95 = arith.constant 0 : index
    %236 = vector.load %arg17[%c0_94, %c0_95] : memref<2x128xf32, #tpu.memory_space<vmem>>, vector<2x64xf32>
    tpu.vector_store %arg17[%c0_94, %c0_95], %150 {strides = array<i32>} : memref<2x128xf32, #tpu.memory_space<vmem>>, vector<2x64xf32>,
    %c0_96 = arith.constant 0 : index
    %c64 = arith.constant 64 : index
    %237 = vector.load %arg17[%c0_96, %c64] : memref<2x128xf32, #tpu.memory_space<vmem>>, vector<2x64xf32>
    tpu.vector_store %arg17[%c0_96, %c64], %235 {strides = array<i32>} : memref<2x128xf32, #tpu.memory_space<vmem>>, vector<2x64xf32>,
    %c0_97 = arith.constant 0 : index
    %c0_98 = arith.constant 0 : index
    %238 = vector.load %arg12[%c0_97, %c0_98] : memref<32x32xf32, #tpu.memory_space<vmem>>, vector<32x32xf32>
    %cst_99 = arith.constant dense<0.000000e+00> : vector<2x32xf32>
    %239 = tpu.matmul %33, %238, %cst_99 {dimension_numbers = #tpu.dot_dimension_numbers<[1], [0], [0], [1], [0, 0, 1, 1], [], []>} : vector<2x32xf32>, vector<32x32xf32>, vector<2x32xf32> -> vector<2x32xf32>
    %c0_100 = arith.constant 0 : index
    %c0_101 = arith.constant 0 : index
    %240 = vector.load %arg13[%c0_100, %c0_101] : memref<32x32xf32, #tpu.memory_space<vmem>>, vector<32x32xf32>
    %cst_102 = arith.constant dense<0.000000e+00> : vector<2x32xf32>
    %241 = tpu.matmul %65, %240, %cst_102 {dimension_numbers = #tpu.dot_dimension_numbers<[1], [0], [0], [1], [0, 0, 1, 1], [], []>} : vector<2x32xf32>, vector<32x32xf32>, vector<2x32xf32> -> vector<2x32xf32>
    %242 = arith.addf %239, %241 : vector<2x32xf32>
    %cst_103 = arith.constant dense<0.000000e+00> : vector<32xf32>
    %243 = vector.multi_reduction <add>, %242, %cst_103 [0] : vector<2x32xf32> to vector<32xf32>
    %244 = vector.shape_cast %243 : vector<32xf32> to vector<1x32xf32>
    %cst_104 = arith.constant 2.000000e+00 : f32
    %245 = vector.broadcast %cst_104 : f32 to vector<1x32xf32>
    %246 = arith.divf %244, %245 : vector<1x32xf32>
    %247 = arith.mulf %242, %242 : vector<2x32xf32>
    %cst_105 = arith.constant dense<0.000000e+00> : vector<32xf32>
    %248 = vector.multi_reduction <add>, %247, %cst_105 [0] : vector<2x32xf32> to vector<32xf32>
    %249 = vector.shape_cast %248 : vector<32xf32> to vector<1x32xf32>
    %cst_106 = arith.constant 2.000000e+00 : f32
    %250 = vector.broadcast %cst_106 : f32 to vector<1x32xf32>
    %251 = arith.divf %249, %250 : vector<1x32xf32>
    %252 = arith.mulf %246, %246 : vector<1x32xf32>
    %253 = arith.subf %251, %252 : vector<1x32xf32>
    %cst_107 = arith.constant 0.000000e+00 : f32
    %254 = vector.broadcast %cst_107 : f32 to vector<1x32xf32>
    %255 = arith.maximumf %253, %254 : vector<1x32xf32>
    %256 = vector.broadcast %246 : vector<1x32xf32> to vector<2x32xf32>
    %257 = arith.subf %242, %256 : vector<2x32xf32>
    %cst_108 = arith.constant 9.99999974E-6 : f32
    %258 = vector.broadcast %cst_108 : f32 to vector<1x32xf32>
    %259 = arith.addf %255, %258 : vector<1x32xf32>
    %260 = math.rsqrt %259 : vector<1x32xf32>
    %261 = vector.broadcast %260 : vector<1x32xf32> to vector<2x32xf32>
    %262 = arith.mulf %257, %261 : vector<2x32xf32>
    %cst_109 = arith.constant 0.000000e+00 : f32
    %263 = vector.broadcast %cst_109 : f32 to vector<2x32xf32>
    %264 = arith.maximumf %262, %263 : vector<2x32xf32>
    %c0_110 = arith.constant 0 : index
    %c0_111 = arith.constant 0 : index
    %265 = vector.load %arg14[%c0_110, %c0_111] : memref<32x32xf32, #tpu.memory_space<vmem>>, vector<32x32xf32>
    %cst_112 = arith.constant dense<0.000000e+00> : vector<2x32xf32>
    %266 = tpu.matmul %264, %265, %cst_112 {dimension_numbers = #tpu.dot_dimension_numbers<[1], [0], [0], [1], [0, 0, 1, 1], [], []>} : vector<2x32xf32>, vector<32x32xf32>, vector<2x32xf32> -> vector<2x32xf32>
    %cst_113 = arith.constant dense<0.000000e+00> : vector<32xf32>
    %267 = vector.multi_reduction <add>, %266, %cst_113 [0] : vector<2x32xf32> to vector<32xf32>
    %268 = vector.shape_cast %267 : vector<32xf32> to vector<1x32xf32>
    %cst_114 = arith.constant 2.000000e+00 : f32
    %269 = vector.broadcast %cst_114 : f32 to vector<1x32xf32>
    %270 = arith.divf %268, %269 : vector<1x32xf32>
    %271 = arith.mulf %266, %266 : vector<2x32xf32>
    %cst_115 = arith.constant dense<0.000000e+00> : vector<32xf32>
    %272 = vector.multi_reduction <add>, %271, %cst_115 [0] : vector<2x32xf32> to vector<32xf32>
    %273 = vector.shape_cast %272 : vector<32xf32> to vector<1x32xf32>
    %cst_116 = arith.constant 2.000000e+00 : f32
    %274 = vector.broadcast %cst_116 : f32 to vector<1x32xf32>
    %275 = arith.divf %273, %274 : vector<1x32xf32>
    %276 = arith.mulf %270, %270 : vector<1x32xf32>
    %277 = arith.subf %275, %276 : vector<1x32xf32>
    %cst_117 = arith.constant 0.000000e+00 : f32
    %278 = vector.broadcast %cst_117 : f32 to vector<1x32xf32>
    %279 = arith.maximumf %277, %278 : vector<1x32xf32>
    %280 = vector.broadcast %270 : vector<1x32xf32> to vector<2x32xf32>
    %281 = arith.subf %266, %280 : vector<2x32xf32>
    %cst_118 = arith.constant 9.99999974E-6 : f32
    %282 = vector.broadcast %cst_118 : f32 to vector<1x32xf32>
    %283 = arith.addf %279, %282 : vector<1x32xf32>
    %284 = math.rsqrt %283 : vector<1x32xf32>
    %285 = vector.broadcast %284 : vector<1x32xf32> to vector<2x32xf32>
    %286 = arith.mulf %281, %285 : vector<2x32xf32>
    %cst_119 = arith.constant 0.000000e+00 : f32
    %287 = vector.broadcast %cst_119 : f32 to vector<2x32xf32>
    %288 = arith.maximumf %286, %287 : vector<2x32xf32>
    %c0_120 = arith.constant 0 : index
    %c0_121 = arith.constant 0 : index
    %289 = vector.load %arg15[%c0_120, %c0_121] : memref<1x32xf32, #tpu.memory_space<vmem>>, vector<1x32xf32>
    %290 = vector.broadcast %289 : vector<1x32xf32> to vector<2x32xf32>
    %291 = arith.mulf %288, %290 : vector<2x32xf32>
    %cst_122 = arith.constant dense<0.000000e+00> : vector<2xf32>
    %292 = vector.multi_reduction <add>, %291, %cst_122 [1] : vector<2x32xf32> to vector<2xf32>
    %293 = vector.shape_cast %292 : vector<2xf32> to vector<2x1xf32>
    %c0_123 = arith.constant 0 : index
    %c0_124 = arith.constant 0 : index
    %294 = vector.load %arg16[%c0_123, %c0_124] : memref<1x1xf32, #tpu.memory_space<vmem>>, vector<1x1xf32>
    %295 = vector.broadcast %294 : vector<1x1xf32> to vector<2x1xf32>
    %296 = arith.addf %293, %295 : vector<2x1xf32>
    %297 = vector.shape_cast %296 : vector<2x1xf32> to vector<2x1xf32>
    %298 = vector.broadcast %297 : vector<2x1xf32> to vector<2x128xf32>
    %c0_125 = arith.constant 0 : index
    %c0_126 = arith.constant 0 : index
    %299 = vector.load %arg18[%c0_125, %c0_126] : memref<2x128xf32, #tpu.memory_space<vmem>>, vector<2x128xf32>
    tpu.vector_store %arg18[%c0_125, %c0_126], %298 {strides = array<i32>} : memref<2x128xf32, #tpu.memory_space<vmem>>, vector<2x128xf32>,
    return
  }
}

</mosaic_0001>

<bundles_post_ra>
// kernel: augself_vicreg_forward.1
= control target key start
LH: loop header
LB: loop body
LE: loop exit
PB: predicated region body
PF: predicated region fallthrough
CT: control target
= control target key end

     0   :  { %v2206_v0 = vmov 0   ;;  %v3125_v21 = vlaneseq  ;;  %vm2208_vm0 = vmmov 0   ;;  %vm859_vm1 = vcmask 130112   ;;  %s2210_s19 = smov 64   ;;  %s3103_s2 = inlined_call_operand.vmem [shape: f32[4,32,1], index: 2, kind: input, shape index: {}]   ;;  %s3104_s3 = inlined_call_operand.vmem [shape: f32[1,32,1], index: 3, kind: input, shape index: {}]   ;;  %s3105_s0 = inlined_call_operand.vmem [shape: f32[2,4,256], index: 0, kind: input, shape index: {}]   ;;  %s3106_s1 = inlined_call_operand.vmem [shape: f32[2,4,256], index: 1, kind: input, shape index: {}]   ;;  %s3107_s4 = inlined_call_operand.vmem [shape: f32[32,64], index: 4, kind: input, shape index: {}]   ;;  %s3108_s6 = inlined_call_operand.vmem [shape: f32[64,64], index: 6, kind: input, shape index: {}]   ;;  %s3109_s5 = inlined_call_operand.vmem [shape: f32[1,64], index: 5, kind: input, shape index: {}]   ;;  %s3110_s8 = inlined_call_operand.vmem [shape: f32[64,64], index: 8, kind: input, shape index: {}]   ;;  %s3111_s7 = inlined_call_operand.vmem [shape: f32[1,64], index: 7, kind: input, shape index: {}]   ;;  %s3112_s13 = inlined_call_operand.vmem [shape: f32[32,32], index: 13, kind: input, shape index: {}]   ;;  %s3113_s12 = inlined_call_operand.vmem [shape: f32[32,32], index: 12, kind: input, shape index: {}]   ;;  %s3114_s9 = inlined_call_operand.vmem [shape: f32[1,64], index: 9, kind: input, shape index: {}]   ;;  %s3115_s10 = inlined_call_operand.vmem [shape: f32[1,64], index: 10, kind: input, shape index: {}]   ;;  %s3116_s11 = inlined_call_operand.vmem [shape: f32[1,64], index: 11, kind: input, shape index: {}]   ;;  %s3117_s17 = inlined_call_operand.vmem [shape: f32[2,128], index: 17, kind: output, shape index: {0}]   ;;  %s3118_s14 = inlined_call_operand.vmem [shape: f32[32,32], index: 14, kind: input, shape index: {}]   ;;  %s3119_s16 = inlined_call_operand.<no memory space> [shape: f32[1,1], index: 16, kind: input, shape index: {}]   ;;  %s3120_s15 = inlined_call_operand.vmem [shape: f32[1,32], index: 15, kind: input, shape index: {}]   ;;  %s3121_s18 = inlined_call_operand.vmem [shape: f32[2,128], index: 18, kind: output, shape index: {1}]  }
   0x1   :  { %3146 = sst [smem:[#allocation26_spill]] %s3103_s2  ;;  %2189 = vset.pattern.permute.xlu1 %v2206_v0  ;;  %2188 = vset.pattern.permute.xlu0 %v2206_v0  ;;  %v2390_v33 = vld [vmem:[%s3106_s1] sm:$0xff]  ;;  %v2395_v34 = vld [vmem:[%s3106_s1 + $0x8] sm:$0xff]  ;;  %vm866_vm2 = vcmask 195712   ;;  %vm873_vm3 = vcmask 261312   ;;  %vm894_vm4 = vcmask 1041409  }
   0x2   :  { %3147 = sst [smem:[#allocation27_spill]] %s3104_s3  ;;  %s3149_s29 = sld [smem:[#allocation26_spill]]  ;;  %v2367_v22 = vshrl.u32 %v3125_v21, 7  ;;  %vm896_vm5 = vcmask 261120   ;;  %vm969_vm6 = vcmask 517120   ;;  %vm1011_vm7 = vcmask 523264  }
   0x3   :  { %3148 = sst [smem:[#allocation28_spill]] %s3105_s0  ;;  %s3150_s20 = sld [smem:[#allocation27_spill]]  ;;  %vm1734_vm8 = vcmask 254976   ;;  %vm1584_vm9 = vcmask 1041920  }
   0x4   :  { %3151 = vst [vmem:[#allocation3_spill] sm:$0xff] %v2367_v22  ;;  %v106_v23 = vsub.s32 0, %v2367_v22  ;;  %s3152_s30 = sld [smem:[#allocation28_spill]]  ;;  %v110_v25 = vsub.s32 4, %v2367_v22  ;;  %v194_v28 = vsub.s32 1, %v2367_v22  ;;  %v198_v30 = vsub.s32 5, %v2367_v22 }
   0x5   :  { %v282_v52 = vsub.s32 2, %v2367_v22  ;;  %v286_v53 = vsub.s32 6, %v2367_v22  ;;  %v370_v56 = vsub.s32 3, %v2367_v22  ;;  %v374_v57 = vsub.s32 7, %v2367_v22 }
   0x6   :  { %v512_v37 = vrot.slane %v2390_v33, %v106_v23  ;;  %v516_v38 = vrot.slane %v2390_v33, %v110_v25  ;;  %v520_v45 = vrot.slane %v2395_v34, %v106_v23  ;;  %v524_v46 = vrot.slane %v2395_v34, %v110_v25 }
   0x7   :  { %v580_v47 = vrot.slane %v2390_v33, %v194_v28  ;;  %v584_v48 = vrot.slane %v2390_v33, %v198_v30  ;;  %v588_v49 = vrot.slane %v2395_v34, %v194_v28  ;;  %v592_v50 = vrot.slane %v2395_v34, %v198_v30 }
   0x8   :  { %v62_v1 = vld [vmem:[%s3149_s29 + $0x10] sm:$0xff]  ;;  %v60_v2 = vld [vmem:[%s3149_s29] sm:$0xff]  ;;  %v61_v4 = vld [vmem:[%s3149_s29 + $0x8] sm:$0xff]  ;;  %v2421_v54 = vrot.slane %v512_v37, %v106_v23  ;;  %v2427_v58 = vrot.slane %v516_v38, %v106_v23  ;;  %v2433_v61 = vrot.slane %v520_v45, %v106_v23  ;;  %v2435_v62 = vrot.slane %v524_v46, %v106_v23 }
   0x9   :  { %152 = vperm.xlu1 %2189, %v62_v1   ;;  %142 = vperm.xlu0 %2188, %v60_v2   ;;  %v76_v3 = vld [vmem:[%s3150_s20] sm:$0xff]  ;;  %v63_v5 = vld [vmem:[%s3149_s29 + $0x18] sm:$0xff]  ;;  %v77_v6 = vld [vmem:[%s3150_s20 + $0x8] sm:$0xff]  ;;  %v2437_v63 = vrot.slane %v580_v47, %v194_v28  ;;  %v2439_v0 = vrot.slane %v584_v48, %v194_v28  ;;  %v2441_v1 = vrot.slane %v588_v49, %v194_v28 }
   0xa   :  { %v65_v7 = vld [vmem:[%s3149_s29 + $0x28] sm:$0xff]  ;;  %v64_v8 = vld [vmem:[%s3149_s29 + $0x20] sm:$0xff]  ;;  %v66_v9 = vld [vmem:[%s3149_s29 + $0x30] sm:$0xff]  ;;  %v2443_v2 = vrot.slane %v592_v50, %v194_v28 }
   0xb   :  { %v78_v10 = vld [vmem:[%s3150_s20 + $0x10] sm:$0xff]  ;;  %v67_v11 = vld [vmem:[%s3149_s29 + $0x38] sm:$0xff]  ;;  %v69_v13 = vld [vmem:[%s3149_s29 + $0x48] sm:$0xff]  ;;  %3153 = vst [vmem:[#allocation4_spill] sm:$0xff] %v2441_v1 }
   0xc   :  { %v79_v12 = vld [vmem:[%s3150_s20 + $0x18] sm:$0xff]  ;;  %v68_v14 = vld [vmem:[%s3149_s29 + $0x40] sm:$0xff]  ;;  %v70_v16 = vld [vmem:[%s3149_s29 + $0x50] sm:$0xff]  ;;  %3154 = vst [vmem:[#allocation5_spill] sm:$0xff] %v2443_v2 }
   0xd   :  { %84 = vperm.xlu1 %2189, %v76_v3   ;;  %147 = vperm.xlu0 %2188, %v61_v4   ;;  %v71_v15 = vld [vmem:[%s3149_s29 + $0x58] sm:$0xff]  ;;  %v73_v17 = vld [vmem:[%s3149_s29 + $0x68] sm:$0xff]  ;;  %v72_v18 = vld [vmem:[%s3149_s29 + $0x60] sm:$0xff] }
   0xe   :  { %v75_v19 = vld [vmem:[%s3149_s29 + $0x78] sm:$0xff]  ;;  %v74_v20 = vld [vmem:[%s3149_s29 + $0x70] sm:$0xff]  ;;  %v2373_v24 = vld [vmem:[%s3152_s30] sm:$0xff] }
   0xf   :  { %v2379_v26 = vld [vmem:[%s3152_s30 + $0x8] sm:$0xff]  ;;  %v107_v27 = vrot.slane %v2373_v24, %v106_v23  ;;  %v111_v29 = vrot.slane %v2373_v24, %v110_v25  ;;  %v195_v36 = vrot.slane %v2373_v24, %v194_v28  ;;  %v199_v40 = vrot.slane %v2373_v24, %v198_v30 }
  0x10   :  { %v115_v31 = vrot.slane %v2379_v26, %v106_v23  ;;  %v119_v32 = vrot.slane %v2379_v26, %v110_v25  ;;  %v203_v43 = vrot.slane %v2379_v26, %v194_v28  ;;  %v207_v44 = vrot.slane %v2379_v26, %v198_v30 }
  0x11   :  { %157 = vperm.xlu1 %2189, %v63_v5   ;;  %89 = vperm.xlu0 %2188, %v77_v6   ;;  %v2397_v35 = vrot.slane %v107_v27, %v106_v23  ;;  %v2402_v39 = vrot.slane %v111_v29, %v106_v23  ;;  %v2417_v51 = vrot.slane %v195_v36, %v194_v28 }
  0x12   :  { %v2405_v41 = vrot.slane %v115_v31, %v106_v23  ;;  %v2407_v42 = vrot.slane %v119_v32, %v106_v23  ;;  %v2423_v55 = vrot.slane %v199_v40, %v194_v28  ;;  %v2429_v59 = vrot.slane %v203_v43, %v194_v28 }
  0x13   :  { %v2431_v60 = vrot.slane %v207_v44, %v194_v28  ;;  %v283_v3 = vrot.slane %v2373_v24, %v282_v52  ;;  %v287_v4 = vrot.slane %v2373_v24, %v286_v53  ;;  %v291_v5 = vrot.slane %v2379_v26, %v282_v52 }
  0x14   :  { %v295_v6 = vrot.slane %v2379_v26, %v286_v53 }
  0x15   :  { %235 = vperm.xlu1 %2189, %v65_v7   ;;  %230 = vperm.xlu0 %2188, %v64_v8   ;;  %v371_v7 = vrot.slane %v2373_v24, %v370_v56  ;;  %v375_v8 = vrot.slane %v2373_v24, %v374_v57  ;;  %v2465_v23 = vrot.slane %v291_v5, %v282_v52 }
  0x16   :  { %v2467_v24 = vrot.slane %v295_v6, %v282_v52 }
  0x17   :  { %v2469_v25 = vrot.slane %v371_v7, %v370_v56 }
  0x19   :  { %240 = vperm.xlu1 %2189, %v66_v9   ;;  %94 = vperm.xlu0 %2188, %v78_v10   ;;  %v648_v9 = vrot.slane %v2390_v33, %v282_v52  ;;  %v652_v10 = vrot.slane %v2390_v33, %v286_v53 }
  0x1b   :  { %v2473_v27 = vrot.slane %v648_v9, %v282_v52  ;;  %v2475_v28 = vrot.slane %v652_v10, %v282_v52 }
  0x1d   :  { %245 = vperm.xlu1 %2189, %v67_v11   ;;  %99 = vperm.xlu0 %2188, %v79_v12   ;;  %v379_v11 = vrot.slane %v2379_v26, %v370_v56  ;;  %v383_v12 = vrot.slane %v2379_v26, %v374_v57  ;;  %v2471_v26 = vrot.slane %v375_v8, %v370_v56 }
  0x1f   :  { %v2477_v29 = vrot.slane %v379_v11, %v370_v56  ;;  %v2479_v30 = vrot.slane %v383_v12, %v370_v56 }
  0x21   :  { %323 = vperm.xlu1 %2189, %v69_v13   ;;  %318 = vperm.xlu0 %2188, %v68_v14   ;;  %v656_v13 = vrot.slane %v2395_v34, %v282_v52  ;;  %v660_v14 = vrot.slane %v2395_v34, %v286_v53 }
  0x23   :  { %v2481_v31 = vrot.slane %v656_v13, %v282_v52  ;;  %v2483_v32 = vrot.slane %v660_v14, %v282_v52 }
  0x25   :  { %333 = vperm.xlu1 %2189, %v71_v15   ;;  %328 = vperm.xlu0 %2188, %v70_v16   ;;  %v716_v15 = vrot.slane %v2390_v33, %v370_v56  ;;  %v720_v16 = vrot.slane %v2390_v33, %v374_v57  ;;  %3155 = vst [vmem:[#allocation6_spill] sm:$0xff] %v2481_v31  ;;  %3156 = vst [vmem:[#allocation7_spill] sm:$0xff] %v2483_v32 }
  0x27   :  { %v2485_v36 = vrot.slane %v716_v15, %v370_v56  ;;  %v2487_v37 = vrot.slane %v720_v16, %v370_v56 }
  0x29   :  { %411 = vperm.xlu1 %2189, %v73_v17   ;;  %406 = vperm.xlu0 %2188, %v72_v18   ;;  %v724_v17 = vrot.slane %v2395_v34, %v370_v56  ;;  %v728_v18 = vrot.slane %v2395_v34, %v374_v57 }
  0x2b   :  { %v2489_v38 = vrot.slane %v724_v17, %v370_v56  ;;  %v2491_v40 = vrot.slane %v728_v18, %v370_v56 }
  0x2d   :  { %421 = vperm.xlu1 %2189, %v75_v19   ;;  %416 = vperm.xlu0 %2188, %v74_v20   ;;  %v2461_v19 = vrot.slane %v283_v3, %v282_v52  ;;  %v2463_v20 = vrot.slane %v287_v4, %v282_v52  ;;  %3157 = vst [vmem:[#allocation8_spill] sm:$0xff] %v2489_v38  ;;  %3158 = vst [vmem:[#allocation9_spill] sm:$0xff] %v2491_v40 }
  0x88   :  { %v153_v33 = vpop.permute.xlu1 %152  ;;  %v143_v34 = vpop.permute.xlu0 %142 }
  0x89   :  { %v160_v43 = vmul.f32 %v143_v34, %v2397_v35  ;;  %v161_v44 = vmul.f32 %v143_v34, %v2402_v39  ;;  %v2496_v45 = vmul.f32 %v153_v33, %v2397_v35  ;;  %v2499_v46 = vmul.f32 %v153_v33, %v2402_v39 }
  0x8a   :  { %v168_v47 = vmul.f32 %v143_v34, %v2405_v41  ;;  %v169_v48 = vmul.f32 %v143_v34, %v2407_v42  ;;  %v545_v49 = vmul.f32 %v2421_v54, %v143_v34  ;;  %v546_v50 = vmul.f32 %v2427_v58, %v143_v34 }
  0x8b   :  { %v2506_v52 = vmul.f32 %v153_v33, %v2405_v41  ;;  %v2509_v53 = vmul.f32 %v153_v33, %v2407_v42  ;;  %v553_v56 = vmul.f32 %v2433_v61, %v143_v34  ;;  %v554_v57 = vmul.f32 %v2435_v62, %v143_v34 }
  0x8c   :  { %v85_v3 = vpop.permute.xlu1 %84  ;;  %v148_v4 = vpop.permute.xlu0 %147  ;;  %v2514_v5 = vmul.f32 %v2421_v54, %v153_v33  ;;  %v2517_v6 = vmul.f32 %v2427_v58, %v153_v33  ;;  %v2520_v7 = vmul.f32 %v2433_v61, %v153_v33  ;;  %v2523_v8 = vmul.f32 %v2435_v62, %v153_v33 }
  0x8d   :  { %v162_v9 = vmul.f32 %v148_v4, %v2397_v35  ;;  %v163_v10 = vmul.f32 %v148_v4, %v2402_v39  ;;  %v176_v11 = vadd.f32 %v160_v43, %v85_v3  ;;  %v177_v12 = vadd.f32 %v161_v44, %v85_v3 }
  0x8e   :  { %3159 = vst [vmem:[#allocation10_spill] sm:$0xff] %v2520_v7  ;;  %3160 = vst [vmem:[#allocation11_spill] sm:$0xff] %v2523_v8  ;;  %v184_v13 = vadd.f32 %v168_v47, %v85_v3  ;;  %v185_v14 = vadd.f32 %v169_v48, %v85_v3  ;;  %v170_v15 = vmul.f32 %v148_v4, %v2405_v41 }
  0x8f   :  { %v171_v16 = vmul.f32 %v148_v4, %v2407_v42  ;;  %v561_v17 = vadd.f32 %v545_v49, %v85_v3  ;;  %v562_v18 = vadd.f32 %v546_v50, %v85_v3  ;;  %v2529_v34 = vadd.f32 %v553_v56, %v85_v3 }
  0x90   :  { %v2531_v21 = vadd.f32 %v554_v57, %v85_v3  ;;  %v158_v33 = vpop.permute.xlu1 %157  ;;  %v90_v22 = vpop.permute.xlu0 %89  ;;  %v547_v8 = vmul.f32 %v2421_v54, %v148_v4  ;;  %v548_v7 = vmul.f32 %v2427_v58, %v148_v4  ;;  %v555_v43 = vmul.f32 %v2433_v61, %v148_v4 }
  0x91   :  { %v556_v44 = vmul.f32 %v2435_v62, %v148_v4  ;;  %v178_v47 = vadd.f32 %v162_v9, %v90_v22  ;;  %v179_v48 = vadd.f32 %v163_v10, %v90_v22  ;;  %v166_v40 = vmul.f32 %v158_v33, %v2397_v35 }
  0x92   :  { %v167_v49 = vmul.f32 %v158_v33, %v2402_v39  ;;  %v186_v50 = vadd.f32 %v170_v15, %v90_v22  ;;  %v187_v56 = vadd.f32 %v171_v16, %v90_v22  ;;  %v174_v57 = vmul.f32 %v158_v33, %v2405_v41 }
  0x93   :  { %v175_v3 = vmul.f32 %v158_v33, %v2407_v42  ;;  %v2541_v38 = vadd.f32 %v547_v8, %v90_v22  ;;  %v2543_v32 = vadd.f32 %v548_v7, %v90_v22  ;;  %v2546_v31 = vmul.f32 %v2421_v54, %v158_v33 }
  0x94   :  { %v2549_v4 = vmul.f32 %v2427_v58, %v158_v33  ;;  %v2551_v9 = vpop.permute.xlu1 %235  ;;  %v231_v35 = vpop.permute.xlu0 %230  ;;  %v2553_v39 = vadd.f32 %v555_v43, %v90_v22  ;;  %v2555_v10 = vadd.f32 %v556_v44, %v90_v22  ;;  %v2558_v41 = vmul.f32 %v2433_v61, %v158_v33 }
  0x95   :  { %3161 = vst [vmem:[#allocation12_spill] sm:$0xff] %v2541_v38  ;;  %3162 = vst [vmem:[#allocation13_spill] sm:$0xff] %v2543_v32  ;;  %v2561_v42 = vmul.f32 %v2435_v62, %v158_v33  ;;  %v250_v54 = vmul.f32 %v2551_v9, %v2417_v51  ;;  %v251_v58 = vmul.f32 %v2551_v9, %v2423_v55 }
  0x96   :  { %3163 = vst [vmem:[#allocation14_spill] sm:$0xff] %v2546_v31  ;;  %3164 = vst [vmem:[#allocation15_spill] sm:$0xff] %v2549_v4  ;;  %v248_v7 = vmul.f32 %v231_v35, %v2417_v51  ;;  %v249_v8 = vmul.f32 %v231_v35, %v2423_v55  ;;  %v256_v15 = vmul.f32 %v231_v35, %v2429_v59 }
  0x97   :  { %3165 = vst [vmem:[#allocation16_spill] sm:$0xff] %v2551_v9  ;;  %3166 = vst [vmem:[#allocation17_spill] sm:$0xff] %v2553_v39  ;;  %v257_v22 = vmul.f32 %v231_v35, %v2431_v60  ;;  %v258_v61 = vmul.f32 %v2551_v9, %v2429_v59  ;;  %v259_v62 = vmul.f32 %v2551_v9, %v2431_v60 }
  0x98   :  { %3167 = vst [vmem:[#allocation18_spill] sm:$0xff] %v2555_v10  ;;  %3168 = vst [vmem:[#allocation19_spill] sm:$0xff] %v2558_v41  ;;  %v266_v16 = vadd.f32 %v250_v54, %v178_v47  ;;  %v267_v33 = vadd.f32 %v251_v58, %v179_v48  ;;  %v264_v43 = vadd.f32 %v248_v7, %v176_v11  ;;  %v2577_v41 = vpop.permute.xlu0 %94 }
  0x99   :  { %3169 = vst [vmem:[#allocation20_spill] sm:$0xff] %v2561_v42  ;;  %v265_v44 = vadd.f32 %v249_v8, %v177_v12  ;;  %v2575_v42 = vpop.permute.xlu1 %240  ;;  %3170 = vst [vmem:[#allocation21_spill] sm:$0xff] %v2577_v41  ;;  %v272_v10 = vadd.f32 %v256_v15, %v184_v13  ;;  %v273_v39 = vadd.f32 %v257_v22, %v185_v14 }
  0x9a   :  { %v274_v4 = vadd.f32 %v258_v61, %v186_v50  ;;  %v275_v31 = vadd.f32 %v259_v62, %v187_v56  ;;  %v180_v32 = vadd.f32 %v2496_v45, %v2577_v41  ;;  %v181_v38 = vadd.f32 %v2499_v46, %v2577_v41 }
  0x9b   :  { %v252_v47 = vmul.f32 %v2575_v42, %v2417_v51  ;;  %v253_v11 = vmul.f32 %v2575_v42, %v2423_v55  ;;  %v613_v12 = vmul.f32 %v2437_v63, %v231_v35  ;;  %v614_v48 = vmul.f32 %v2439_v0, %v231_v35 }
  0x9c   :  { %v188_v13 = vadd.f32 %v2506_v52, %v2577_v41  ;;  %v189_v14 = vadd.f32 %v2509_v53, %v2577_v41  ;;  %v260_v46 = vmul.f32 %v2575_v42, %v2429_v59  ;;  %v261_v56 = vmul.f32 %v2575_v42, %v2431_v60  ;;  %v2599_v58 = vpop.permute.xlu0 %99 }
  0x9d   :  { %v268_v45 = vadd.f32 %v252_v47, %v180_v32  ;;  %v269_v50 = vadd.f32 %v253_v11, %v181_v38  ;;  %v2597_v54 = vpop.permute.xlu1 %245  ;;  %3172 = vst [vmem:[#allocation23_spill] sm:$0xff] %v2599_v58  ;;  %v629_v7 = vadd.f32 %v613_v12, %v561_v17  ;;  %v630_v8 = vadd.f32 %v614_v48, %v562_v18 }
  0x9e   :  { %3171 = vst [vmem:[#allocation22_spill] sm:$0xff] %v2597_v54  ;;  %v621_v15 = vmul.f32 %v2441_v1, %v231_v35  ;;  %v622_v52 = vmul.f32 %v2443_v2, %v231_v35  ;;  %v182_v53 = vadd.f32 %v166_v40, %v2599_v58  ;;  %v183_v32 = vadd.f32 %v167_v49, %v2599_v58 }
  0x9f   :  { %v254_v38 = vmul.f32 %v2597_v54, %v2417_v51  ;;  %v255_v22 = vmul.f32 %v2597_v54, %v2423_v55  ;;  %v276_v61 = vadd.f32 %v260_v46, %v188_v13  ;;  %v277_v62 = vadd.f32 %v261_v56, %v189_v14 }
  0xa0   :  { %v2610_v47 = vadd.f32 %v621_v15, %v2529_v34  ;;  %v2613_v17 = vadd.f32 %v622_v52, %v2531_v21  ;;  %v2616_v40 = vadd.f32 %v174_v57, %v2599_v58  ;;  %v2619_v49 = vadd.f32 %v175_v3, %v2599_v58  ;;  %v2623_v11 = vpop.permute.xlu0 %318 }
  0xa1   :  { %v270_v18 = vadd.f32 %v254_v38, %v182_v53  ;;  %v271_v35 = vadd.f32 %v255_v22, %v183_v32  ;;  %v2621_v51 = vpop.permute.xlu1 %323  ;;  %v2627_v55 = vmul.f32 %v2597_v54, %v2429_v59  ;;  %v2631_v21 = vmul.f32 %v2597_v54, %v2431_v60 }
  0xa2   :  { %3173 = vst [vmem:[#allocation24_spill] sm:$0xff] %v2621_v51  ;;  %v2635_v34 = vadd.f32 %v2514_v5, %v2577_v41  ;;  %v2639_v57 = vadd.f32 %v2517_v6, %v2577_v41  ;;  %v338_v3 = vmul.f32 %v2621_v51, %v2461_v19  ;;  %v339_v12 = vmul.f32 %v2621_v51, %v2463_v20 }
  0xa3   :  { %v336_v59 = vmul.f32 %v2623_v11, %v2461_v19  ;;  %v337_v60 = vmul.f32 %v2623_v11, %v2463_v20  ;;  %v344_v5 = vmul.f32 %v2623_v11, %v2465_v23  ;;  %v345_v48 = vmul.f32 %v2623_v11, %v2467_v24 }
  0xa4   :  { %3174 = vst [vmem:[#allocation25_spill] sm:$0xff] %v2639_v57  ;;  %v346_v6 = vmul.f32 %v2621_v51, %v2465_v23  ;;  %v347_v13 = vmul.f32 %v2621_v51, %v2467_v24  ;;  %v354_v14 = vadd.f32 %v338_v3, %v266_v16  ;;  %v355_v46 = vadd.f32 %v339_v12, %v267_v33  ;;  %v2659_v53 = vpop.permute.xlu0 %328 }
  0xa5   :  { %v352_v56 = vadd.f32 %v336_v59, %v264_v43  ;;  %v353_v15 = vadd.f32 %v337_v60, %v265_v44  ;;  %v2657_v52 = vpop.permute.xlu1 %333  ;;  %v360_v32 = vadd.f32 %v344_v5, %v272_v10  ;;  %v361_v38 = vadd.f32 %v345_v48, %v273_v39 }
  0xa6   :  { %v362_v22 = vadd.f32 %v346_v6, %v274_v4  ;;  %v363_v41 = vadd.f32 %v347_v13, %v275_v31  ;;  %v340_v2 = vmul.f32 %v2659_v53, %v2461_v19  ;;  %v341_v1 = vmul.f32 %v2659_v53, %v2463_v20 }
  0xa7   :  { %v342_v16 = vmul.f32 %v2657_v52, %v2461_v19  ;;  %v343_v33 = vmul.f32 %v2657_v52, %v2463_v20  ;;  %v681_v43 = vmul.f32 %v2473_v27, %v2623_v11  ;;  %v682_v39 = vmul.f32 %v2475_v28, %v2623_v11 }
  0xa8   :  { %v348_v31 = vmul.f32 %v2659_v53, %v2465_v23  ;;  %v349_v4 = vmul.f32 %v2659_v53, %v2467_v24  ;;  %v356_v10 = vadd.f32 %v340_v2, %v268_v45  ;;  %v357_v44 = vadd.f32 %v341_v1, %v269_v50  ;;  %v2679_v59 = vpop.permute.xlu0 %406 }
  0xa9   :  { %v358_v3 = vadd.f32 %v342_v16, %v270_v18  ;;  %v359_v12 = vadd.f32 %v343_v33, %v271_v35  ;;  %v2677_v19 = vpop.permute.xlu1 %411  ;;  %v697_v20 = vadd.f32 %v681_v43, %v629_v7  ;;  %v698_v60 = vadd.f32 %v682_v39, %v630_v8 }
  0xaa   :  { %v364_v5 = vadd.f32 %v348_v31, %v276_v61  ;;  %v365_v48 = vadd.f32 %v349_v4, %v277_v62  ;;  %v426_v6 = vmul.f32 %v2677_v19, %v2469_v25  ;;  %v427_v13 = vmul.f32 %v2677_v19, %v2471_v26 }
  0xab   :  { %v424_v2 = vmul.f32 %v2679_v59, %v2469_v25  ;;  %v425_v1 = vmul.f32 %v2679_v59, %v2471_v26  ;;  %v432_v45 = vmul.f32 %v2679_v59, %v2477_v29  ;;  %v433_v50 = vmul.f32 %v2679_v59, %v2479_v30 }
  0xac   :  { %v434_v7 = vmul.f32 %v2677_v19, %v2477_v29  ;;  %v435_v8 = vmul.f32 %v2677_v19, %v2479_v30  ;;  %v442_v61 = vadd.f32 %v426_v6, %v354_v14  ;;  %v443_v62 = vadd.f32 %v427_v13, %v355_v46  ;;  %v2699_v33 = vpop.permute.xlu0 %416 }
  0xad   :  { %v440_v18 = vadd.f32 %v424_v2, %v352_v56  ;;  %v441_v35 = vadd.f32 %v425_v1, %v353_v15  ;;  %v2697_v16 = vpop.permute.xlu1 %421  ;;  %v448_v43 = vadd.f32 %v432_v45, %v360_v32  ;;  %v449_v39 = vadd.f32 %v433_v50, %v361_v38 }
  0xae   :  { %v450_v31 = vadd.f32 %v434_v7, %v362_v22  ;;  %v451_v4 = vadd.f32 %v435_v8, %v363_v41  ;;  %v458_v54 = vmax.f32 %v442_v61, 0.0  ;;  %v459_v58 = vmax.f32 %v443_v62, 0.0 }
  0xaf   :  { %v456_v51 = vmax.f32 %v440_v18, 0.0  ;;  %v457_v9 = vmax.f32 %v441_v35, 0.0  ;;  %v428_v57 = vmul.f32 %v2699_v33, %v2469_v25  ;;  %v429_v14 = vmul.f32 %v2699_v33, %v2471_v26  ;;  %v3175_v18 = vld [vmem:[#allocation6_spill] sm:$0xff] }
  0xb0   :  { %v464_v46 = vmax.f32 %v448_v43, 0.0  ;;  %v465_v56 = vmax.f32 %v449_v39, 0.0  ;;  %v475_v15 = vadd.f32 %v459_v58, %v458_v54  ;;  %v430_v32 = vmul.f32 %v2697_v16, %v2469_v25  ;;  %v3176_v43 = vld [vmem:[#allocation7_spill] sm:$0xff] }
  0xb1   :  { %v472_v6 = vadd.f32 %v457_v9, %v456_v51  ;;  %v431_v41 = vmul.f32 %v2697_v16, %v2471_v26  ;;  %v444_v38 = vadd.f32 %v428_v57, %v356_v10  ;;  %v445_v22 = vadd.f32 %v429_v14, %v357_v44 }
  0xb2   :  { %v484_v13 = vadd.f32 %v465_v56, %v464_v46  ;;  %v466_v2 = vmax.f32 %v450_v31, 0.0  ;;  %476 = vadd.xlane.f32.xlu1 %v475_v15  ;;  %v446_v1 = vadd.f32 %v430_v32, %v358_v3  ;;  %v467_v50 = vmax.f32 %v451_v4, 0.0  ;;  %v3178_v56 = vld [vmem:[#allocation9_spill] sm:$0xff] }
  0xb3   :  { %473 = vadd.xlane.f32.xlu0 %v472_v6  ;;  %v447_v45 = vadd.f32 %v431_v41, %v359_v12  ;;  %v749_v7 = vmul.f32 %v2485_v36, %v2679_v59  ;;  %v460_v54 = vmax.f32 %v444_v38, 0.0  ;;  %v461_v9 = vmax.f32 %v445_v22, 0.0 }
  0xb4   :  { %v750_v25 = vmul.f32 %v2487_v37, %v2679_v59  ;;  %v436_v26 = vmul.f32 %v2699_v33, %v2477_v29  ;;  %v462_v58 = vmax.f32 %v446_v1, 0.0  ;;  %v487_v57 = vadd.f32 %v467_v50, %v466_v2 }
  0xb5   :  { %v463_v51 = vmax.f32 %v447_v45, 0.0  ;;  %v765_v10 = vadd.f32 %v749_v7, %v697_v20  ;;  %v478_v44 = vadd.f32 %v461_v9, %v460_v54  ;;  %v437_v3 = vmul.f32 %v2699_v33, %v2479_v30  ;;  %v3177_v20 = vld [vmem:[#allocation8_spill] sm:$0xff]  ;;  %v3179_v7 = vld [vmem:[#allocation25_spill] sm:$0xff] }
  0xb6   :  { %v766_v8 = vadd.f32 %v750_v25, %v698_v60  ;;  %v452_v12 = vadd.f32 %v436_v26, %v364_v5  ;;  %v689_v35 = vmul.f32 %v3175_v18, %v2623_v11  ;;  %v690_v39 = vmul.f32 %v3176_v43, %v2623_v11 }
  0xb7   :  { %485 = vadd.xlane.f32.xlu0 %v484_v13  ;;  %v481_v61 = vadd.f32 %v463_v51, %v462_v58  ;;  %v781_v62 = vmax.f32 %v765_v10, 0.0  ;;  %479 = vadd.xlane.f32.xlu1 %v478_v44  ;;  %v453_v4 = vadd.f32 %v437_v3, %v365_v48  ;;  %v757_v60 = vmul.f32 %v3177_v20, %v2679_v59  ;;  %v3180_v58 = vld [vmem:[#allocation16_spill] sm:$0xff] }
  0xb8   :  { %v782_v31 = vmax.f32 %v766_v8, 0.0  ;;  %v468_v14 = vmax.f32 %v452_v12, 0.0  ;;  %v705_v46 = vadd.f32 %v689_v35, %v2610_v47  ;;  %v706_v5 = vadd.f32 %v690_v39, %v2613_v17  ;;  %v3181_v8 = vld [vmem:[#allocation24_spill] sm:$0xff] }
  0xb9   :  { %v758_v15 = vmul.f32 %v3178_v56, %v2679_v59  ;;  %v278_v6 = vadd.f32 %v2627_v55, %v2616_v40  ;;  %v469_v41 = vmax.f32 %v453_v4, 0.0  ;;  %v279_v11 = vadd.f32 %v2631_v21, %v2619_v49 }
  0xba   :  { %v797_v32 = vadd.f32 %v782_v31, %v781_v62  ;;  %v350_v48 = vmul.f32 %v2657_v52, %v2465_v23  ;;  %v773_v38 = vadd.f32 %v757_v60, %v705_v46  ;;  %v351_v47 = vmul.f32 %v2657_v52, %v2467_v24 }
  0xbb   :  { %488 = vadd.xlane.f32.xlu0 %v487_v57  ;;  %v774_v22 = vadd.f32 %v758_v15, %v706_v5  ;;  %v438_v17 = vmul.f32 %v2697_v16, %v2477_v29  ;;  %482 = vadd.xlane.f32.xlu1 %v481_v61  ;;  %v490_v59 = vadd.f32 %v469_v41, %v468_v14  ;;  %v3182_v61 = vld [vmem:[#allocation12_spill] sm:$0xff]  ;;  %v3183_v14 = vld [vmem:[#allocation13_spill] sm:$0xff] }
  0xbc   :  { %v366_v40 = vadd.f32 %v350_v48, %v278_v6  ;;  %v439_v55 = vmul.f32 %v2697_v16, %v2479_v30  ;;  %v617_v49 = vmul.f32 %v2437_v63, %v2575_v42  ;;  %v789_v21 = vmax.f32 %v773_v38, 0.0  ;;  %v3184_v6 = vld [vmem:[#allocation23_spill] sm:$0xff] }
  0xbd   :  { %v790_v23 = vmax.f32 %v774_v22, 0.0  ;;  %v367_v13 = vadd.f32 %v351_v47, %v279_v11  ;;  %v618_v2 = vmul.f32 %v2439_v0, %v2575_v42  ;;  %v685_v29 = vmul.f32 %v2473_v27, %v2659_v53  ;;  %v3186_v11 = vld [vmem:[#allocation15_spill] sm:$0xff]  ;;  %v3187_v47 = vld [vmem:[#allocation22_spill] sm:$0xff] }
  0xbe   :  { %v454_v1 = vadd.f32 %v438_v17, %v366_v40  ;;  %v633_v24 = vadd.f32 %v617_v49, %v2635_v34  ;;  %v686_v45 = vmul.f32 %v2475_v28, %v2659_v53  ;;  %v753_v9 = vmul.f32 %v2485_v36, %v2699_v33 }
  0xbf   :  { %491 = vadd.xlane.f32.xlu0 %v490_v59  ;;  %v809_v30 = vadd.f32 %v790_v23, %v789_v21  ;;  %v455_v50 = vadd.f32 %v439_v55, %v367_v13  ;;  %v634_v54 = vadd.f32 %v618_v2, %v3179_v7  ;;  %798 = vadd.xlane.f32.xlu1 %v797_v32  ;;  %v3185_v32 = vld [vmem:[#allocation14_spill] sm:$0xff]  ;;  %v3190_v7 = vld [vmem:[#allocation17_spill] sm:$0xff] }
  0xc0   :  { %v470_v25 = vmax.f32 %v454_v1, 0.0  ;;  %v701_v26 = vadd.f32 %v685_v29, %v633_v24  ;;  %v754_v34 = vmul.f32 %v2487_v37, %v2699_v33  ;;  %v615_v51 = vmul.f32 %v2437_v63, %v3180_v58 }
  0xc1   :  { %v471_v57 = vmax.f32 %v455_v50, 0.0  ;;  %v702_v10 = vadd.f32 %v686_v45, %v634_v54  ;;  %v616_v44 = vmul.f32 %v2439_v0, %v3180_v58  ;;  %v683_v3 = vmul.f32 %v2473_v27, %v3181_v8  ;;  %v3189_v45 = vld [vmem:[#allocation5_spill] sm:$0xff] }
  0xc2   :  { %v769_v12 = vadd.f32 %v753_v9, %v701_v26  ;;  %v631_v62 = vadd.f32 %v615_v51, %v3182_v61  ;;  %v684_v35 = vmul.f32 %v2475_v28, %v3181_v8  ;;  %v751_v39 = vmul.f32 %v2485_v36, %v2677_v19  ;;  %v3191_v9 = vld [vmem:[#allocation18_spill] sm:$0xff] }
  0xc3   :  { %v493_v31 = vadd.f32 %v471_v57, %v470_v25  ;;  %v770_v4 = vadd.f32 %v754_v34, %v702_v10  ;;  %v632_v60 = vadd.f32 %v616_v44, %v3183_v14  ;;  %v752_v46 = vmul.f32 %v2487_v37, %v2677_v19  ;;  %810 = vadd.xlane.f32.xlu1 %v809_v30 }
  0xc4   :  { %v785_v5 = vmax.f32 %v769_v12, 0.0  ;;  %v699_v15 = vadd.f32 %v683_v3, %v631_v62  ;;  %v567_v41 = vadd.f32 %v3185_v32, %v3184_v6  ;;  %v568_v48 = vadd.f32 %v3186_v11, %v3184_v6  ;;  %v3192_v3 = vld [vmem:[#allocation21_spill] sm:$0xff]  ;;  %v3193_v12 = vld [vmem:[#allocation10_spill] sm:$0xff]  ;;  %v3194_v62 = vld [vmem:[#allocation11_spill] sm:$0xff] }
  0xc5   :  { %494 = vadd.xlane.f32.xlu0 %v493_v31  ;;  %v786_v38 = vmax.f32 %v770_v4, 0.0  ;;  %v700_v22 = vadd.f32 %v684_v35, %v632_v60  ;;  %v619_v17 = vmul.f32 %v2437_v63, %v3187_v47  ;;  %v620_v59 = vmul.f32 %v2439_v0, %v3187_v47  ;;  %v3188_v0 = vld [vmem:[#allocation4_spill] sm:$0xff] }
  0xc6   :  { %v767_v40 = vadd.f32 %v751_v39, %v699_v15  ;;  %v687_v55 = vmul.f32 %v2473_v27, %v2657_v52  ;;  %v688_v49 = vmul.f32 %v2475_v28, %v2657_v52  ;;  %v755_v21 = vmul.f32 %v2485_v36, %v2697_v16 }
  0xc7   :  { %v803_v23 = vadd.f32 %v786_v38, %v785_v5  ;;  %v768_v13 = vadd.f32 %v752_v46, %v700_v22  ;;  %v635_v2 = vadd.f32 %v619_v17, %v567_v41  ;;  %v636_v1 = vadd.f32 %v620_v59, %v568_v48 }
  0xc8   :  { %v783_v24 = vmax.f32 %v767_v40, 0.0  ;;  %v756_v63 = vmul.f32 %v2487_v37, %v2697_v16  ;;  %v623_v29 = vmul.f32 %v3188_v0, %v3180_v58  ;;  %v624_v27 = vmul.f32 %v3189_v45, %v3180_v58  ;;  %v3196_v40 = vld [vmem:[#allocation20_spill] sm:$0xff] }
  0xc9   :  { %804 = vadd.xlane.f32.xlu1 %v803_v23  ;;  %v784_v30 = vmax.f32 %v768_v13, 0.0  ;;  %v703_v28 = vadd.f32 %v687_v55, %v635_v2  ;;  %v704_v50 = vadd.f32 %v688_v49, %v636_v1  ;;  %v691_v36 = vmul.f32 %v3175_v18, %v3181_v8 }
  0xca   :  { %v639_v54 = vadd.f32 %v623_v29, %v3190_v7  ;;  %v640_v25 = vadd.f32 %v624_v27, %v3191_v9  ;;  %v692_v37 = vmul.f32 %v3176_v43, %v3181_v8  ;;  %v759_v26 = vmul.f32 %v3177_v20, %v2677_v19 }
  0xcb   :  { %v800_v34 = vadd.f32 %v784_v30, %v783_v24  ;;  %v771_v51 = vadd.f32 %v755_v21, %v703_v28  ;;  %v772_v58 = vadd.f32 %v756_v63, %v704_v50  ;;  %v760_v57 = vmul.f32 %v3178_v56, %v2677_v19 }
  0xcc   :  { %v707_v10 = vadd.f32 %v691_v36, %v639_v54  ;;  %v708_v44 = vadd.f32 %v692_v37, %v640_v25  ;;  %v573_v61 = vadd.f32 %v3193_v12, %v3192_v3  ;;  %v574_v35 = vadd.f32 %v3194_v62, %v3192_v3 }
  0xcd   :  { %801 = vadd.xlane.f32.xlu0 %v800_v34  ;;  %v787_v39 = vmax.f32 %v771_v51, 0.0  ;;  %v788_v8 = vmax.f32 %v772_v58, 0.0  ;;  %v625_v31 = vmul.f32 %v3188_v0, %v2575_v42  ;;  %v626_v4 = vmul.f32 %v3189_v45, %v2575_v42  ;;  %v3195_v42 = vld [vmem:[#allocation19_spill] sm:$0xff] }
  0xce   :  { %v775_v14 = vadd.f32 %v759_v26, %v707_v10  ;;  %v776_v60 = vadd.f32 %v760_v57, %v708_v44  ;;  %v693_v19 = vmul.f32 %v3175_v18, %v2659_v53  ;;  %v694_v46 = vmul.f32 %v3176_v43, %v2659_v53 }
  0xcf   :  { %v806_v5 = vadd.f32 %v788_v8, %v787_v39  ;;  %v641_v15 = vadd.f32 %v625_v31, %v573_v61  ;;  %v642_v32 = vadd.f32 %v626_v4, %v574_v35  ;;  %v761_v41 = vmul.f32 %v3177_v20, %v2699_v33  ;;  %v3198_v61 = vld [vmem:[#allocation3_spill] sm:$0xff] }
  0xd0   :  { %v791_v11 = vmax.f32 %v775_v14, 0.0  ;;  %v792_v48 = vmax.f32 %v776_v60, 0.0  ;;  %v762_v38 = vmul.f32 %v3178_v56, %v2699_v33  ;;  %v575_v22 = vadd.f32 %v3195_v42, %v3184_v6 }
  0xd1   :  { %807 = vadd.xlane.f32.xlu1 %v806_v5  ;;  %v709_v17 = vadd.f32 %v693_v19, %v641_v15  ;;  %v710_v59 = vadd.f32 %v694_v46, %v642_v32  ;;  %v576_v53 = vadd.f32 %v3196_v40, %v3184_v6  ;;  %v627_v55 = vmul.f32 %v3188_v0, %v3187_v47 }
  0xd2   :  { %v812_v49 = vadd.f32 %v792_v48, %v791_v11  ;;  %v628_v21 = vmul.f32 %v3189_v45, %v3187_v47  ;;  %v695_v23 = vmul.f32 %v3175_v18, %v2657_v52  ;;  %v696_v33 = vmul.f32 %v3176_v43, %v2657_v52  ;;  %v829_v47 = vld [vmem:[%s3107_s4] sm:$0xff]  ;;  %v830_v18 = vld [vmem:[%s3107_s4 + $0x8] sm:$0xff] }
  0xd3   :  { %v777_v13 = vadd.f32 %v761_v41, %v709_v17  ;;  %v778_v2 = vadd.f32 %v762_v38, %v710_v59  ;;  %v643_v1 = vadd.f32 %v627_v55, %v575_v22  ;;  %v763_v24 = vmul.f32 %v3177_v20, %v2697_v16  ;;  %v831_v20 = vld [vmem:[%s3107_s4 + $0x10] sm:$0xff] }
  0xd4   :  { %813 = vadd.xlane.f32.xlu0 %v812_v49  ;;  %v644_v6 = vadd.f32 %v628_v21, %v576_v53  ;;  %v764_v63 = vmul.f32 %v3178_v56, %v2697_v16  ;;  %v832_v16 = vld [vmem:[%s3107_s4 + $0x18] sm:$0xff]  ;;  %v2207_v27 = vmov 0.0|0.0   ;;  %v2842_v30 = vpack.c.bf16 %v830_v18, %v829_v47 }
  0xd5   :  { %v793_v52 = vmax.f32 %v777_v13, 0.0  ;;  %v794_v43 = vmax.f32 %v778_v2, 0.0  ;;  %v711_v0 = vadd.f32 %v695_v23, %v643_v1  ;;  %2103 = vmatprep.subr.bf16.mxu0 %v2207_v27  ;;  %2109 = vmatprep.subr.bf16.mxu1 %v2207_v27  ;;  %v2846_v36 = vpack.c.bf16 %v832_v16, %v831_v20 }
  0xd6   :  { %v712_v29 = vadd.f32 %v696_v33, %v644_v6  ;;  %2105 = vmatpush3.bf16.msra.mxu0 %v2842_v30  ;;  %v2209_v9 = vmov 0.0   ;;  %v3197_v26 = vlaneseq }
  0xd7   :  { %v815_v56 = vadd.f32 %v794_v43, %v793_v52  ;;  %v779_v45 = vadd.f32 %v763_v24, %v711_v0  ;;  %2106 = vmatprep.subr.bf16.mxu0 %v2207_v27  ;;  %1980 = vmatprep.mubr.msk.f32.mxu0 %vm2208_vm0, %v2209_v9 }
  0xd8   :  { %v780_v28 = vadd.f32 %v764_v63, %v712_v29  ;;  %1999 = vmatprep.mubr.msk.f32.mxu1 %vm2208_vm0, %v2209_v9  ;;  %v849_v34 = vand.u32 127, %v3197_v26 }
  0xd9   :  { %816 = vadd.xlane.f32.xlu0 %v815_v56  ;;  %v795_v50 = vmax.f32 %v779_v45, 0.0 }
  0xda   :  { %v796_v7 = vmax.f32 %v780_v28, 0.0  ;;  %2108 = vmatpush3.bf16.msra.mxu0 %v2846_v36  ;;  %v854_v57 = vadd.s32 4294967288, %v849_v34  ;;  %v861_v3 = vadd.s32 4294967280, %v849_v34  ;;  %v868_v12 = vadd.s32 4294967272, %v849_v34 }
  0xdb   :  { %2121 = vmatprep.subr.bf16.mxu0 %v2207_v27  ;;  %v852_v8 = vsub.s32 %v849_v34, %v3198_v61 }
  0xdc   :  { %v818_v54 = vadd.f32 %v796_v7, %v795_v50  ;;  %v857_v62 = vsub.s32 %v854_v57, %v3198_v61  ;;  %v864_v60 = vsub.s32 %v861_v3, %v3198_v61  ;;  %v871_v15 = vsub.s32 %v868_v12, %v3198_v61 }
  0xde   :  { %819 = vadd.xlane.f32.xlu0 %v818_v54 }
 0x13f   :  { %v477_v25 = vpop.xlane.xlu1 %476 }
 0x140   :  { %v474_v37 = vpop.xlane.xlu0 %473  ;;  %v498_v39 = vmul.f32 0.00390625, %v477_v25 }
 0x141   :  { %v497_v31 = vmul.f32 0.00390625, %v474_v37 }
 0x142   :  { %v858_v41 = vrot.slane %v498_v39, %v857_v62  ;;  %v998_v39 = vld [vmem:[%s3108_s6 + $0x10] sm:$0xff] }
 0x143   :  { %v853_v11 = vrot.slane %v497_v31, %v852_v8  ;;  %v999_v31 = vld [vmem:[%s3108_s6 + $0x18] sm:$0xff] }
 0x144   :  { %v486_v51 = vpop.xlane.xlu0 %485  ;;  %v480_v58 = vpop.xlane.xlu1 %479 }
 0x145   :  { %v499_v19 = vmul.f32 0.00390625, %v480_v58  ;;  %v501_v5 = vmul.f32 0.00390625, %v486_v51  ;;  %v860_v55 = vsel %vm859_vm1, %v858_v41, %v853_v11 }
 0x147   :  { %v865_v42 = vrot.slane %v499_v19, %v864_v60  ;;  %v878_v59 = vrot.slane %v501_v5, %v852_v8  ;;  %v1003_v5 = vld [vmem:[%s3108_s6 + $0x38] sm:$0xff] }
 0x148   :  { %v489_v10 = vpop.xlane.xlu0 %488  ;;  %v483_v44 = vpop.xlane.xlu1 %482 }
 0x149   :  { %v502_v4 = vmul.f32 0.00390625, %v489_v10  ;;  %v500_v32 = vmul.f32 0.00390625, %v483_v44  ;;  %v867_v23 = vsel %vm866_vm2, %v865_v42, %v860_v55 }
 0x14b   :  { %v882_v48 = vrot.slane %v502_v4, %v857_v62  ;;  %v872_v40 = vrot.slane %v500_v32, %v871_v15  ;;  %v2897_v4 = vpack.c.bf16 %v999_v31, %v998_v39  ;;  %v2925_v32 = vld [vmem:[%s3109_s5] ss:$0 sm:$0xff] }
 0x14c   :  { %v492_v35 = vpop.xlane.xlu0 %491  ;;  %v799_v14 = vpop.xlane.xlu1 %798 }
 0x14d   :  { %v503_v46 = vmul.f32 0.00390625, %v492_v35  ;;  %v883_v49 = vsel %vm859_vm1, %v882_v48, %v878_v59  ;;  %v874_v2 = vsel %vm873_vm3, %v872_v40, %v867_v23  ;;  %v821_v63 = vmul.f32 0.00390625, %v799_v14  ;;  %v996_v35 = vld [vmem:[%s3108_s6] sm:$0xff] }
 0x14e   :  { %v1000_v14 = vld [vmem:[%s3108_s6 + $0x20] sm:$0xff] }
 0x14f   :  { %v887_v22 = vrot.slane %v503_v46, %v864_v60  ;;  %v1249_v43 = vrot.slane %v821_v63, %v852_v8  ;;  %v1002_v46 = vld [vmem:[%s3108_s6 + $0x30] sm:$0xff] }
 0x150   :  { %v811_v38 = vpop.xlane.xlu1 %810 }
 0x151   :  { %v888_v33 = vsel %vm866_vm2, %v887_v22, %v883_v49  ;;  %v825_v56 = vmul.f32 0.00390625, %v811_v38 }
 0x152   :  { %v495_v17 = vpop.xlane.xlu0 %494 }
 0x153   :  { %v504_v53 = vmul.f32 0.00390625, %v495_v17  ;;  %v1268_v25 = vrot.slane %v825_v56, %v852_v8  ;;  %v1110_v56 = vld [vmem:[%s3110_s8] sm:$0xff] }
 0x155   :  { %v892_v21 = vrot.slane %v504_v53, %v871_v15 }
 0x156   :  { %v805_v13 = vpop.xlane.xlu1 %804 }
 0x157   :  { %v893_v1 = vsel %vm873_vm3, %v892_v21, %v888_v33  ;;  %v823_v24 = vmul.f32 0.00390625, %v805_v13 }
 0x158   :  { %v2867_v6 = vsel %vm894_vm4, %v893_v1, %v874_v2 }
 0x159   :  { %1981 = vmatmul.mubr.msk.f32.vlgmr.msra.gmra.mrb[0].mxu0 %vm896_vm5, %v2867_v6  ;;  %v1258_v52 = vrot.slane %v823_v24, %v864_v60 }
 0x15a   :  { %v802_v47 = vpop.xlane.xlu0 %801  ;;  %2018 = vmatprep.mubr.msk.f32.mxu0 %vm2208_vm0, %v2209_v9 }
 0x15b   :  { %v822_v18 = vmul.f32 0.00390625, %v802_v47 }
 0x15d   :  { %v1253_v0 = vrot.slane %v822_v18, %v857_v62 }
 0x15e   :  { %v808_v29 = vpop.xlane.xlu1 %807 }
 0x15f   :  { %v1254_v20 = vsel %vm859_vm1, %v1253_v0, %v1249_v43  ;;  %v824_v16 = vmul.f32 0.00390625, %v808_v29 }
 0x160   :  { %v1259_v45 = vsel %vm866_vm2, %v1258_v52, %v1254_v20 }
 0x161   :  { %v1263_v28 = vrot.slane %v824_v16, %v871_v15  ;;  %v814_v50 = vpop.xlane.xlu0 %813 }
 0x162   :  { %v826_v7 = vmul.f32 0.00390625, %v814_v50 }
 0x163   :  { %v1264_v54 = vsel %vm873_vm3, %v1263_v28, %v1259_v45  ;;  %v1113_v28 = vld [vmem:[%s3110_s8 + $0x18] sm:$0xff] }
 0x164   :  { %v1272_v37 = vrot.slane %v826_v7, %v857_v62  ;;  %v997_v62 = vld [vmem:[%s3108_s6 + $0x8] sm:$0xff]  ;;  %v1114_v7 = vld [vmem:[%s3110_s8 + $0x20] sm:$0xff] }
 0x165   :  { %v2891_v8 = vpack.c.bf16 %v997_v62, %v996_v35 }
 0x166   :  { %v1273_v26 = vsel %vm859_vm1, %v1272_v37, %v1268_v25  ;;  %v817_v34 = vpop.xlane.xlu0 %816  ;;  %v1116_v37 = vld [vmem:[%s3110_s8 + $0x30] sm:$0xff] }
 0x167   :  { %v827_v51 = vmul.f32 0.00390625, %v817_v34  ;;  %2111 = vmatpush3.bf16.msra.mxu1 %v2891_v8 }
 0x168   :  { %2112 = vmatprep.subr.bf16.mxu1 %v2207_v27 }
 0x169   :  { %v1277_v58 = vrot.slane %v827_v51, %v864_v60  ;;  %v1001_v60 = vld [vmem:[%s3108_s6 + $0x28] sm:$0xff]  ;;  %v2976_v51 = vld [vmem:[%s3111_s7] ss:$0 sm:$0xff] }
 0x16a   :  { %v2907_v19 = vpack.c.bf16 %v1001_v60, %v1000_v14 }
 0x16b   :  { %v1278_v57 = vsel %vm866_vm2, %v1277_v58, %v1273_v26  ;;  %v820_v10 = vpop.xlane.xlu0 %819  ;;  %2114 = vmatpush3.bf16.msra.mxu1 %v2897_v4  ;;  %v1117_v26 = vld [vmem:[%s3110_s8 + $0x38] sm:$0xff] }
 0x16c   :  { %v828_v44 = vmul.f32 0.00390625, %v820_v10  ;;  %2115 = vmatprep.subr.bf16.mxu1 %v2207_v27  ;;  %v2131_v34 = vpack.c.bf16 %v1117_v26, %v1116_v37 }
 0x16e   :  { %v1282_v3 = vrot.slane %v828_v44, %v871_v15  ;;  %v2917_v15 = vpack.c.bf16 %v1003_v5, %v1002_v46 }
 0x16f   :  { %2117 = vmatpush3.bf16.msra.mxu1 %v2907_v19 }
 0x170   :  { %v1283_v12 = vsel %vm873_vm3, %v1282_v3, %v1278_v57  ;;  %2118 = vmatprep.subr.bf16.mxu1 %v2207_v27 }
 0x171   :  { %v2880_v61 = vsel %vm894_vm4, %v1283_v12, %v1264_v54  ;;  %v1115_v54 = vld [vmem:[%s3110_s8 + $0x28] sm:$0xff] }
 0x172   :  { %v2128_v25 = vpack.c.bf16 %v1115_v54, %v1114_v7 }
 0x173   :  { %2120 = vmatpush3.bf16.msra.mxu1 %v2917_v15 }
 0x174   :  { %2133 = vmatprep.subr.bf16.mxu1 %v2207_v27 }
 0x22c   :  { %v965_v41 = vpop.f32.mrb[0].mxu0 }
 0x22d   :  { %v966_v11 = vadd.f32 %v2925_v32, %v965_v41  ;;  %v1982_v48 = vpop.f32.mrb[1].mxu0 }
 0x22f   :  { %v970_v38 = vsel %vm969_vm6, %v966_v11, 0.0  ;;  %v979_v42 = vmul.f32 %v966_v11, %v966_v11 }
 0x230   :  { %v971_v22 = vrot.slane %v970_v38, 4 }
 0x231   :  { %v980_v17 = vsel %vm969_vm6, %v979_v42, 0.0 }
 0x232   :  { %v972_v59 = vadd.f32 %v971_v22, %v970_v38  ;;  %v981_v40 = vrot.slane %v980_v17, 4 }
 0x234   :  { %v973_v53 = vrot.slane %v972_v59, 2  ;;  %v982_v55 = vadd.f32 %v981_v40, %v980_v17 }
 0x236   :  { %v974_v49 = vadd.f32 %v973_v53, %v972_v59  ;;  %v983_v21 = vrot.slane %v982_v55, 2 }
 0x238   :  { %v975_v23 = vrot.slane %v974_v49, 1  ;;  %v984_v33 = vadd.f32 %v983_v21, %v982_v55 }
 0x23a   :  { %v976_v13 = vadd.f32 %v975_v23, %v974_v49  ;;  %v985_v2 = vrot.slane %v984_v33, 1 }
 0x23c   :  { %v978_v1 = vmul.f32 0.5, %v976_v13  ;;  %v986_v24 = vadd.f32 %v985_v2, %v984_v33 }
 0x23e   :  { %v987_v63 = vmul.f32 0.5, %v986_v24  ;;  %v988_v47 = vmul.f32 %v978_v1, %v978_v1  ;;  %v991_v0 = vsub.f32 %v966_v11, %v978_v1 }
 0x240   :  { %v989_v18 = vsub.f32 %v987_v63, %v988_v47 }
 0x242   :  { %v990_v52 = vmax.f32 %v989_v18, 0.0 }
 0x244   :  { %v992_v43 = vadd.f32 1e-05, %v990_v52 }
 0x246   :  { %2190 = vrsqrt.f32 %v992_v43 }
 0x250   :  { %v2191_v29 = vpop.eup %2190 }
 0x251   :  { %v994_v20 = vmul.f32 %v2191_v29, %v991_v0 }
 0x253   :  { %v995_v16 = vmax.f32 %v994_v20, 0.0 }
 0x255   :  { %2000 = vmatmul.mubr.msk.f32.vlgmr.msra.gmra.mrb[0].mxu1 %vm1011_vm7, %v995_v16 }
 0x256   :  { %2135 = vmatpush3.bf16.msra.mxu1 %v2842_v30  ;;  %2029 = vmatprep.mubr.msk.f32.mxu1 %vm2208_vm0, %v2209_v9  ;;  %v1111_v30 = vld [vmem:[%s3110_s8 + $0x8] sm:$0xff] }
 0x257   :  { %2136 = vmatprep.subr.bf16.mxu1 %v2207_v27  ;;  %v2122_v45 = vpack.c.bf16 %v1111_v30, %v1110_v56 }
 0x259   :  { %2123 = vmatpush3.bf16.msra.mxu0 %v2122_v45 }
 0x25a   :  { %2138 = vmatpush3.bf16.msra.mxu1 %v2846_v36  ;;  %v1112_v36 = vld [vmem:[%s3110_s8 + $0x10] sm:$0xff]  ;;  %2124 = vmatprep.subr.bf16.mxu0 %v2207_v27 }
 0x25b   :  { %2151 = vmatprep.subr.bf16.mxu1 %v2207_v27  ;;  %v2125_v50 = vpack.c.bf16 %v1113_v28, %v1112_v36 }
 0x25d   :  { %2030 = vmatmul.mubr.msk.f32.vlgmr.msra.gmra.mrb[2].mxu1 %vm896_vm5, %v2880_v61  ;;  %2126 = vmatpush3.bf16.msra.mxu0 %v2125_v50 }
 0x25e   :  { %2067 = vmatprep.mubr.msk.f32.mxu1 %vm2208_vm0, %v2209_v9  ;;  %2153 = vmatpush3.bf16.msra.mxu1 %v2122_v45 }
 0x25f   :  { %2154 = vmatprep.subr.bf16.mxu1 %v2207_v27  ;;  %2127 = vmatprep.subr.bf16.mxu0 %v2207_v27 }
 0x261   :  { %2129 = vmatpush3.bf16.msra.mxu0 %v2128_v25 }
 0x262   :  { %2156 = vmatpush3.bf16.msra.mxu1 %v2125_v50  ;;  %2130 = vmatprep.subr.bf16.mxu0 %v2207_v27 }
 0x263   :  { %2157 = vmatprep.subr.bf16.mxu1 %v2207_v27 }
 0x265   :  { %2132 = vmatpush3.bf16.msra.mxu0 %v2131_v34 }
 0x266   :  { %2159 = vmatpush3.bf16.msra.mxu1 %v2128_v25  ;;  %2139 = vmatprep.subr.bf16.mxu0 %v2207_v27 }
 0x267   :  { %2160 = vmatprep.subr.bf16.mxu1 %v2207_v27 }
 0x26a   :  { %2162 = vmatpush3.bf16.msra.mxu1 %v2131_v34 }
 0x26b   :  { %2175 = vmatprep.subr.bf16.mxu1 %v2207_v27 }
 0x328   :  { %v1081_v58 = vpop.f32.mrb[0].mxu1 }
 0x329   :  { %v1082_v57 = vadd.f32 %v2976_v51, %v1081_v58  ;;  %v2001_v10 = vpop.f32.mrb[1].mxu1  ;;  %v1591_v58 = vld [vmem:[%s3112_s13 + $0x8] sm:$0xff] }
 0x32a   :  { %v1593_v10 = vld [vmem:[%s3112_s13 + $0x18] sm:$0xff] }
 0x32b   :  { %v1085_v44 = vsel %vm969_vm6, %v1082_v57, 0.0  ;;  %v1093_v3 = vmul.f32 %v1082_v57, %v1082_v57 }
 0x32c   :  { %v1086_v12 = vrot.slane %v1085_v44, 4 }
 0x32d   :  { %v1094_v35 = vsel %vm969_vm6, %v1093_v3, 0.0  ;;  %v1587_v3 = vld [vmem:[%s3113_s12 + $0x8] sm:$0xff] }
 0x32e   :  { %v1087_v62 = vadd.f32 %v1086_v12, %v1085_v44  ;;  %v1095_v39 = vrot.slane %v1094_v35, 4 }
 0x330   :  { %v1088_v31 = vrot.slane %v1087_v62, 2  ;;  %v1096_v14 = vadd.f32 %v1095_v39, %v1094_v35  ;;  %v1353_v60 = vpop.f32.mrb[2].mxu1  ;;  %v1588_v35 = vld [vmem:[%s3113_s12 + $0x10] sm:$0xff] }
 0x331   :  { %v1354_v46 = vadd.f32 %v2925_v32, %v1353_v60  ;;  %v2031_v5 = vpop.f32.mrb[3].mxu1 }
 0x332   :  { %v1089_v41 = vadd.f32 %v1088_v31, %v1087_v62  ;;  %v1097_v11 = vrot.slane %v1096_v14, 2  ;;  %v1589_v62 = vld [vmem:[%s3113_s12 + $0x18] sm:$0xff]  ;;  %v3034_v31 = vld [vmem:[%s3114_s9] ss:$0 sm:$0xff] }
 0x333   :  { %v1357_v48 = vsel %vm969_vm6, %v1354_v46, 0.0  ;;  %v1365_v38 = vmul.f32 %v1354_v46, %v1354_v46  ;;  %v2173_v39 = vpack.c.bf16 %v1589_v62, %v1588_v35 }
 0x334   :  { %v1090_v42 = vrot.slane %v1089_v41, 1  ;;  %v1098_v22 = vadd.f32 %v1097_v11, %v1096_v14  ;;  %v1358_v17 = vrot.slane %v1357_v48, 4 }
 0x335   :  { %v1366_v59 = vsel %vm969_vm6, %v1365_v38, 0.0 }
 0x336   :  { %v1091_v40 = vadd.f32 %v1090_v42, %v1089_v41  ;;  %v1099_v53 = vrot.slane %v1098_v22, 1  ;;  %v1359_v55 = vadd.f32 %v1358_v17, %v1357_v48  ;;  %v1367_v49 = vrot.slane %v1366_v59, 4 }
 0x338   :  { %v1092_v21 = vmul.f32 0.5, %v1091_v40  ;;  %v1100_v23 = vadd.f32 %v1099_v53, %v1098_v22  ;;  %v1360_v33 = vrot.slane %v1359_v55, 2  ;;  %v1368_v13 = vadd.f32 %v1367_v49, %v1366_v59 }
 0x33a   :  { %v1101_v32 = vmul.f32 0.5, %v1100_v23  ;;  %v1102_v2 = vmul.f32 %v1092_v21, %v1092_v21  ;;  %v1361_v1 = vadd.f32 %v1360_v33, %v1359_v55  ;;  %v1369_v24 = vrot.slane %v1368_v13, 2 }
 0x33b   :  { %v1105_v50 = vsub.f32 %v1082_v57, %v1092_v21 }
 0x33c   :  { %v1103_v63 = vsub.f32 %v1101_v32, %v1102_v2  ;;  %v1362_v47 = vrot.slane %v1361_v1, 1  ;;  %v1370_v18 = vadd.f32 %v1369_v24, %v1368_v13 }
 0x33e   :  { %v1104_v52 = vmax.f32 %v1103_v63, 0.0  ;;  %v1363_v43 = vadd.f32 %v1362_v47, %v1361_v1  ;;  %v1371_v0 = vrot.slane %v1370_v18, 1 }
 0x340   :  { %v1106_v29 = vadd.f32 1e-05, %v1104_v52  ;;  %v1364_v20 = vmul.f32 0.5, %v1363_v43  ;;  %v1372_v16 = vadd.f32 %v1371_v0, %v1370_v18 }
 0x342   :  { %2192 = vrsqrt.f32 %v1106_v29  ;;  %v1374_v56 = vmul.f32 %v1364_v20, %v1364_v20  ;;  %v1373_v30 = vmul.f32 0.5, %v1372_v16  ;;  %v1377_v26 = vsub.f32 %v1354_v46, %v1364_v20 }
 0x344   :  { %v1375_v36 = vsub.f32 %v1373_v30, %v1374_v56 }
 0x346   :  { %v1376_v45 = vmax.f32 %v1375_v36, 0.0 }
 0x348   :  { %v1378_v28 = vadd.f32 1e-05, %v1376_v45 }
 0x34a   :  { %2194 = vrsqrt.f32 %v1378_v28 }
 0x34c   :  { %v2193_v7 = vpop.eup %2192 }
 0x34d   :  { %v1108_v54 = vmul.f32 %v2193_v7, %v1105_v50 }
 0x34f   :  { %v1109_v25 = vmax.f32 %v1108_v54, 0.0 }
 0x351   :  { %2019 = vmatmul.mubr.msk.f32.vlgmr.msra.gmra.mrb[2].mxu0 %vm1011_vm7, %v1109_v25 }
 0x352   :  { %2141 = vmatpush3.bf16.msra.mxu0 %v2891_v8  ;;  %2048 = vmatprep.mubr.msk.f32.mxu0 %vm2208_vm0, %v2209_v9  ;;  %v1590_v8 = vld [vmem:[%s3112_s13] sm:$0xff] }
 0x353   :  { %2142 = vmatprep.subr.bf16.mxu0 %v2207_v27 }
 0x354   :  { %v2195_v37 = vpop.eup %2194 }
 0x355   :  { %v1380_v34 = vmul.f32 %v2195_v37, %v1377_v26 }
 0x356   :  { %2144 = vmatpush3.bf16.msra.mxu0 %v2897_v4  ;;  %v2164_v4 = vpack.c.bf16 %v1591_v58, %v1590_v8 }
 0x357   :  { %2145 = vmatprep.subr.bf16.mxu0 %v2207_v27  ;;  %v1381_v57 = vmax.f32 %v1380_v34, 0.0 }
 0x35a   :  { %2147 = vmatpush3.bf16.msra.mxu0 %v2907_v19  ;;  %v1592_v19 = vld [vmem:[%s3112_s13 + $0x10] sm:$0xff] }
 0x35b   :  { %2148 = vmatprep.subr.bf16.mxu0 %v2207_v27  ;;  %v2167_v44 = vpack.c.bf16 %v1593_v10, %v1592_v19 }
 0x35e   :  { %2150 = vmatpush3.bf16.msra.mxu0 %v2917_v15  ;;  %v1586_v15 = vld [vmem:[%s3113_s12] sm:$0xff] }
 0x35f   :  { %2163 = vmatprep.subr.bf16.mxu0 %v2207_v27  ;;  %v2170_v12 = vpack.c.bf16 %v1587_v3, %v1586_v15  ;;  %v3052_v3 = vld [vmem:[%s3115_s10] ss:$0 sm:$0xff] }
 0x361   :  { %2049 = vmatmul.mubr.msk.f32.vlgmr.msra.gmra.mrb[4].mxu0 %vm1011_vm7, %v1381_v57 }
 0x362   :  { %2165 = vmatpush3.bf16.msra.mxu0 %v2164_v4  ;;  %2078 = vmatprep.mubr.msk.f32.mxu0 %vm2208_vm0, %v2209_v9 }
 0x363   :  { %2166 = vmatprep.subr.bf16.mxu0 %v2207_v27 }
 0x366   :  { %2168 = vmatpush3.bf16.msra.mxu0 %v2167_v44 }
 0x367   :  { %2169 = vmatprep.subr.bf16.mxu0 %v2207_v27 }
 0x369   :  { %2079 = vmatmul.mubr.msk.f32.vlgmr.msra.gmra.mrb[6].mxu0 %vm896_vm5, %v2880_v61 }
 0x36a   :  { %2171 = vmatpush3.bf16.msra.mxu0 %v2170_v12  ;;  %2089 = vmatprep.mubr.msk.f32.mxu0 %vm2208_vm0, %v2209_v9 }
 0x36b   :  { %2172 = vmatprep.subr.bf16.mxu0 %v2207_v27 }
 0x36e   :  { %2174 = vmatpush3.bf16.msra.mxu0 %v2173_v39 }
 0x371   :  { %2090 = vmatmul.mubr.msk.f32.vlgmr.msra.gmra.mrb[6].mxu0 %vm896_vm5, %v2867_v6 }
 0x424   :  { %v1194_v14 = vpop.f32.mrb[2].mxu0 }
 0x425   :  { %v1195_v60 = vadd.f32 %v3034_v31, %v1194_v14  ;;  %v2020_v61 = vpop.f32.mrb[3].mxu0  ;;  %v3057_v14 = vld [vmem:[%s3116_s11] ss:$0 sm:$0xff] }
 0x427   :  { %v1199_v46 = vsel %vm969_vm6, %v1195_v60, 0.0  ;;  %v1207_v5 = vmul.f32 %v1195_v60, %v1195_v60 }
 0x428   :  { %v1200_v41 = vrot.slane %v1199_v46, 4 }
 0x429   :  { %v1208_v11 = vsel %vm969_vm6, %v1207_v5, 0.0 }
 0x42a   :  { %v1201_v48 = vadd.f32 %v1200_v41, %v1199_v46  ;;  %v1209_v38 = vrot.slane %v1208_v11, 4 }
 0x42c   :  { %v1202_v42 = vrot.slane %v1201_v48, 2  ;;  %v1210_v22 = vadd.f32 %v1209_v38, %v1208_v11 }
 0x42e   :  { %v1203_v6 = vadd.f32 %v1202_v42, %v1201_v48  ;;  %v1211_v17 = vrot.slane %v1210_v22, 2 }
 0x430   :  { %v1204_v59 = vrot.slane %v1203_v6, 1  ;;  %v1212_v40 = vadd.f32 %v1211_v17, %v1210_v22 }
 0x432   :  { %v1205_v53 = vadd.f32 %v1204_v59, %v1203_v6  ;;  %v1213_v55 = vrot.slane %v1212_v40, 1 }
 0x434   :  { %v1206_v49 = vmul.f32 0.5, %v1205_v53  ;;  %v1214_v21 = vadd.f32 %v1213_v55, %v1212_v40  ;;  %v1451_v23 = vpop.f32.mrb[4].mxu0  ;;  %v1760_v55 = vld [vmem:[%s3118_s14] sm:$0xff] }
 0x435   :  { %v3040_v33 = vadd.f32 %v2976_v51, %v1451_v23  ;;  %v2050_v13 = vpop.f32.mrb[5].mxu0 }
 0x436   :  { %v1215_v32 = vmul.f32 0.5, %v1214_v21  ;;  %v1216_v2 = vmul.f32 %v1206_v49, %v1206_v49  ;;  %v1219_v4 = vsub.f32 %v1195_v60, %v1206_v49  ;;  %v1761_v49 = vld [vmem:[%s3118_s14 + $0x8] sm:$0xff] }
 0x437   :  { %v1455_v1 = vsel %vm969_vm6, %v3040_v33, 0.0  ;;  %v1463_v24 = vmul.f32 %v3040_v33, %v3040_v33 }
 0x438   :  { %v1217_v63 = vsub.f32 %v1215_v32, %v1216_v2  ;;  %v1456_v47 = vrot.slane %v1455_v1, 4  ;;  %v2176_v2 = vpack.c.bf16 %v1761_v49, %v1760_v55 }
 0x439   :  { %v1464_v18 = vsel %vm969_vm6, %v1463_v24, 0.0  ;;  %v1762_v24 = vld [vmem:[%s3118_s14 + $0x10] sm:$0xff] }
 0x43a   :  { %v1218_v52 = vmax.f32 %v1217_v63, 0.0  ;;  %v1457_v43 = vadd.f32 %v1456_v47, %v1455_v1  ;;  %v1465_v0 = vrot.slane %v1464_v18, 4 }
 0x43c   :  { %v1220_v29 = vadd.f32 1e-05, %v1218_v52  ;;  %v1458_v20 = vrot.slane %v1457_v43, 2  ;;  %v1466_v51 = vadd.f32 %v1465_v0, %v1464_v18  ;;  %v24_v0 = vstv %s3119_s16 }
 0x43d   :  { %25 = vst [vmem:[#allocation2] sm:$0x1] %v24_v0 }
 0x43e   :  { %2196 = vrsqrt.f32 %v1220_v29  ;;  %v1459_v16 = vadd.f32 %v1458_v20, %v1457_v43  ;;  %v1467_v56 = vrot.slane %v1466_v51, 2 }
 0x440   :  { %v1460_v30 = vrot.slane %v1459_v16, 1  ;;  %v1468_v36 = vadd.f32 %v1467_v56, %v1466_v51 }
 0x442   :  { %v1461_v45 = vadd.f32 %v1460_v30, %v1459_v16  ;;  %v1469_v28 = vrot.slane %v1468_v36, 1 }
 0x444   :  { %v1462_v50 = vmul.f32 0.5, %v1461_v45  ;;  %v1470_v7 = vadd.f32 %v1469_v28, %v1468_v36  ;;  %v1730_v54 = vpop.f32.mrb[6].mxu0 }
 0x445   :  { %v1735_v25 = vsel %vm1734_vm8, %v1730_v54, 0.0  ;;  %v1743_v37 = vmul.f32 %v1730_v54, %v1730_v54  ;;  %v2091_v26 = vpop.f32.mrb[7].mxu0 }
 0x446   :  { %v1471_v34 = vmul.f32 0.5, %v1470_v7  ;;  %v1472_v8 = vmul.f32 %v1462_v50, %v1462_v50  ;;  %v1736_v58 = vrot.slane %v1735_v25, 4  ;;  %v1475_v53 = vsub.f32 %v3040_v33, %v1462_v50  ;;  %v1763_v33 = vld [vmem:[%s3118_s14 + $0x18] sm:$0xff] }
 0x447   :  { %v1744_v57 = vsel %vm1734_vm8, %v1743_v37, 0.0  ;;  %v2179_v63 = vpack.c.bf16 %v1763_v33, %v1762_v24 }
 0x448   :  { %v2197_v19 = vpop.eup %2196  ;;  %v1473_v10 = vsub.f32 %v1471_v34, %v1472_v8  ;;  %v1737_v44 = vadd.f32 %v1736_v58, %v1735_v25  ;;  %v1745_v15 = vrot.slane %v1744_v57, 4 }
 0x449   :  { %v1222_v12 = vmul.f32 %v2197_v19, %v1219_v4 }
 0x44a   :  { %v1474_v35 = vmax.f32 %v1473_v10, 0.0  ;;  %v1738_v62 = vrot.slane %v1737_v44, 2  ;;  %v1746_v39 = vadd.f32 %v1745_v15, %v1744_v57 }
 0x44b   :  { %v1229_v60 = vmul.f32 %v3052_v3, %v1222_v12 }
 0x44c   :  { %v1476_v61 = vadd.f32 1e-05, %v1474_v35  ;;  %v1739_v46 = vadd.f32 %v1738_v62, %v1737_v44  ;;  %v1747_v5 = vrot.slane %v1746_v39, 2 }
 0x44d   :  { %v1237_v41 = vadd.f32 %v3057_v14, %v1229_v60 }
 0x44e   :  { %2198 = vrsqrt.f32 %v1476_v61  ;;  %v1740_v11 = vrot.slane %v1739_v46, 1  ;;  %v1748_v48 = vadd.f32 %v1747_v5, %v1746_v39 }
 0x44f   :  { %1579 = vst.msk [vmem:[%s3117_s17] sm:$0x3] %vm969_vm6, %v1237_v41 }
 0x450   :  { %v1741_v38 = vadd.f32 %v1740_v11, %v1739_v46  ;;  %v1749_v42 = vrot.slane %v1748_v48, 1 }
 0x452   :  { %v1742_v22 = vmul.f32 0.5, %v1741_v38  ;;  %v1750_v6 = vadd.f32 %v1749_v42, %v1748_v48 }
 0x454   :  { %v1751_v17 = vmul.f32 0.5, %v1750_v6  ;;  %v1752_v59 = vmul.f32 %v1742_v22, %v1742_v22  ;;  %v1755_v47 = vsub.f32 %v1730_v54, %v1742_v22 }
 0x456   :  { %v1753_v40 = vsub.f32 %v1751_v17, %v1752_v59 }
 0x458   :  { %v2199_v21 = vpop.eup %2198  ;;  %v1754_v23 = vmax.f32 %v1753_v40, 0.0 }
 0x459   :  { %v1478_v13 = vmul.f32 %v2199_v21, %v1475_v53 }
 0x45a   :  { %v1756_v32 = vadd.f32 1e-05, %v1754_v23 }
 0x45b   :  { %v1479_v1 = vmax.f32 %v1478_v13, 0.0  ;;  %v1909_v13 = vld [vmem:[%s3120_s15] ss:$0 sm:$0xff] }
 0x45c   :  { %2200 = vrsqrt.f32 %v1756_v32 }
 0x45d   :  { %2068 = vmatmul.mubr.msk.f32.vlgmr.msra.gmra.mrb[4].mxu1 %vm1011_vm7, %v1479_v1 }
 0x45e   :  { %2177 = vmatpush3.bf16.msra.mxu1 %v2176_v2  ;;  %2100 = vmatprep.mubr.msk.f32.mxu1 %vm2208_vm0, %v2209_v9 }
 0x45f   :  { %2178 = vmatprep.subr.bf16.mxu1 %v2207_v27 }
 0x462   :  { %2180 = vmatpush3.bf16.msra.mxu1 %v2179_v63 }
 0x466   :  { %v2201_v18 = vpop.eup %2200 }
 0x467   :  { %v1758_v52 = vmul.f32 %v2201_v18, %v1755_v47 }
 0x469   :  { %v1759_v43 = vmax.f32 %v1758_v52, 0.0  ;;  %v1910_v52 = vld [vmem:[#allocation2] ss:$0 sm:$0xff] }
 0x46b   :  { %2101 = vmatmul.mubr.msk.f32.vlgmr.msra.gmra.mrb[6].mxu1 %vm896_vm5, %v1759_v43 }
 0x530   :  { %v1549_v29 = vpop.f32.mrb[4].mxu1 }
 0x531   :  { %v1550_v20 = vadd.f32 %v3034_v31, %v1549_v29  ;;  %v2069_v51 = vpop.f32.mrb[5].mxu1 }
 0x533   :  { %v1553_v9 = vsel %vm969_vm6, %v1550_v20, 0.0  ;;  %v1561_v16 = vmul.f32 %v1550_v20, %v1550_v20 }
 0x534   :  { %v1554_v27 = vrot.slane %v1553_v9, 4 }
 0x535   :  { %v1562_v56 = vsel %vm969_vm6, %v1561_v16, 0.0 }
 0x536   :  { %v1555_v30 = vadd.f32 %v1554_v27, %v1553_v9  ;;  %v1563_v36 = vrot.slane %v1562_v56, 4 }
 0x538   :  { %v1556_v28 = vrot.slane %v1555_v30, 2  ;;  %v1564_v50 = vadd.f32 %v1563_v36, %v1562_v56 }
 0x53a   :  { %v1557_v34 = vadd.f32 %v1556_v28, %v1555_v30  ;;  %v1565_v8 = vrot.slane %v1564_v50, 2 }
 0x53c   :  { %v1558_v10 = vrot.slane %v1557_v34, 1  ;;  %v1566_v44 = vadd.f32 %v1565_v8, %v1564_v50 }
 0x53e   :  { %v1833_v45 = vpop.f32.mrb[6].mxu1  ;;  %v1559_v39 = vadd.f32 %v1558_v10, %v1557_v34  ;;  %v1567_v60 = vrot.slane %v1566_v44, 1 }
 0x53f   :  { %v1837_v7 = vsel %vm1734_vm8, %v1833_v45, 0.0  ;;  %v1845_v54 = vmul.f32 %v1833_v45, %v1833_v45  ;;  %v2102_v25 = vpop.f32.mrb[7].mxu1 }
 0x540   :  { %v1838_v37 = vrot.slane %v1837_v7, 4  ;;  %v1560_v11 = vmul.f32 0.5, %v1559_v39  ;;  %v1568_v48 = vadd.f32 %v1567_v60, %v1566_v44 }
 0x541   :  { %v1846_v26 = vsel %vm1734_vm8, %v1845_v54, 0.0 }
 0x542   :  { %v1839_v31 = vadd.f32 %v1838_v37, %v1837_v7  ;;  %v1847_v58 = vrot.slane %v1846_v26, 4  ;;  %v1569_v22 = vmul.f32 0.5, %v1568_v48  ;;  %v1570_v6 = vmul.f32 %v1560_v11, %v1560_v11 }
 0x543   :  { %v1573_v33 = vsub.f32 %v1550_v20, %v1560_v11 }
 0x544   :  { %v1840_v4 = vrot.slane %v1839_v31, 2  ;;  %v1848_v57 = vadd.f32 %v1847_v58, %v1846_v26  ;;  %v1571_v40 = vsub.f32 %v1569_v22, %v1570_v6 }
 0x546   :  { %v1841_v19 = vadd.f32 %v1840_v4, %v1839_v31  ;;  %v1849_v15 = vrot.slane %v1848_v57, 2  ;;  %v1572_v53 = vmax.f32 %v1571_v40, 0.0 }
 0x548   :  { %v1842_v12 = vrot.slane %v1841_v19, 1  ;;  %v1850_v35 = vadd.f32 %v1849_v15, %v1848_v57  ;;  %v1574_v55 = vadd.f32 1e-05, %v1572_v53 }
 0x54a   :  { %v1843_v62 = vadd.f32 %v1842_v12, %v1841_v19  ;;  %v1851_v61 = vrot.slane %v1850_v35, 1 }
 0x54c   :  { %v1844_v46 = vmul.f32 0.5, %v1843_v62  ;;  %v1852_v5 = vadd.f32 %v1851_v61, %v1850_v35 }
 0x54e   :  { %v1854_v41 = vmul.f32 %v1844_v46, %v1844_v46  ;;  %v1853_v38 = vmul.f32 0.5, %v1852_v5  ;;  %v1857_v49 = vsub.f32 %v1833_v45, %v1844_v46 }
 0x550   :  { %v1855_v42 = vsub.f32 %v1853_v38, %v1854_v41 }
 0x552   :  { %v1856_v17 = vmax.f32 %v1855_v42, 0.0 }
 0x554   :  { %v1858_v59 = vadd.f32 1e-05, %v1856_v17 }
 0x556   :  { %2202 = vrsqrt.f32 %v1858_v59 }
 0x557   :  { %2204 = vrsqrt.f32 %v1574_v55 }
 0x560   :  { %v2203_v21 = vpop.eup %2202 }
 0x561   :  { %v1860_v23 = vmul.f32 %v2203_v21, %v1857_v49  ;;  %v2205_v24 = vpop.eup %2204 }
 0x562   :  { %v1576_v63 = vmul.f32 %v2205_v24, %v1573_v33 }
 0x563   :  { %v1861_v32 = vmax.f32 %v1860_v23, 0.0 }
 0x564   :  { %v1577_v47 = vmul.f32 %v3052_v3, %v1576_v63 }
 0x565   :  { %v1869_v2 = vmul.f32 %v1909_v13, %v1861_v32 }
 0x566   :  { %v1578_v18 = vadd.f32 %v3057_v14, %v1577_v47 }
 0x567   :  { %v1870_v1 = vsel %vm1734_vm8, %v1869_v2, 0.0 }
 0x568   :  { %1871 = vadd.xlane.f32.xlu1 %v1870_v1 }
 0x579   :  { %1581 = vrot.lane.b32.xlu1 %v1578_v18, %s2210_s19 }
 0x5f5   :  { %v1872_v43 = vpop.xlane.xlu1 %1871 }
 0x5f6   :  { %v1880_v0 = vadd.f32 %v1910_v52, %v1872_v43 }
 0x5f8   :  { %1883 = vperm.xlu0 %2188, %v1880_v0  }
 0x5f9   :  { %v1582_v29 = vpop.permute.xlu1 %1581 }
 0x5fa   :  { %1585 = vst.msk [vmem:[%s3117_s17] sm:$0x3] %vm1584_vm9, %v1582_v29 }
 0x677   :  { %v1884_v51 = vpop.permute.xlu0 %1883 }
 0x678   :  { %1886 = vst [vmem:[%s3121_s18] sm:$0x3] %v1884_v51 }

</bundles_post_ra>
